<compile_context>
chip_gen: v7x
topology: tpu7x:2x2x1
jax: 0.10.0
libtpu: 0.0.40
codegen_flags: <defaults>
</compile_context>

<pallas_src>
import functools

import jax
import jax.numpy as jnp
from jax import lax
from jax.experimental import pallas as pl
from jax.experimental.pallas import tpu as pltpu


def password_lstm_fused_kernel(
    tok_ref,      # [B, T]    int32 tokens (SMEM)
    embp_ref,     # [V, 4H]   embedding @ wih0 + b0   (gather table, lane-dense)
    whh0_ref,     # [H, 4H]   layer-0 recurrent weights (transposed vs PyTorch)
    w1cat_ref,    # [2H, 4H]  concat(wih1, whh1) along input dim
    b1_ref,       # [1, 4H]   b_ih1 + b_hh1
    gamma_ref,    # [1, H]    LayerNorm weight
    beta_ref,     # [1, H]    LayerNorm bias
    fcw_ref,      # [H, Vp]   fc weight (transposed, lane-padded to 128)
    fcb_ref,      # [1, Vp]   fc bias   (lane-padded)
    out_ref,      # [T*Bp, Vp] logits (time-major, batch padded to Bp, lane-dense)
    g0_sc,        # [T*Bp, 4H] scratch: gathered layer-0 gate inputs
    *, seq_len, batch, batch_pad,
):
    T, B, Bp = seq_len, batch, batch_pad
    H = whh0_ref.shape[0]
    G = 4 * H

    # ---- Fused embedding gather + layer-0 input projection (table is pre-folded:
    # emb_proj = embedding @ wih0 + b0).  Rows land at aligned (8,128) tiles; the
    # zero-filled padding rows keep layer-0's recurrence exactly zero.
    g0_sc[...] = jnp.zeros_like(g0_sc)
    for t in range(T):
        for b in range(B):
            row = t * Bp + b
            g0_sc[pl.ds(row, 1), :] = embp_ref[pl.ds(tok_ref[b, t], 1), :]
    g0_all = g0_sc[...]                                        # [T*Bp, 4H]

    # Hoist weights / biases / masks out of the recurrence.
    whh0 = whh0_ref[...]
    w1cat = w1cat_ref[...]
    b1b = jnp.broadcast_to(b1_ref[...], (Bp, G))

    lane = lax.broadcasted_iota(jnp.int32, (Bp, G), 1)
    g_mask = (lane >= 2 * H) & (lane < 3 * H)
    # 0.5 on i/f/o lanes (sigmoid-via-tanh), 1.0 on g lanes -> ONE tanh per cell.
    pre_scale = jnp.where(g_mask, 1.0, 0.5).astype(jnp.float32)

    def cell(gates, c):
        th = jnp.tanh(gates * pre_scale)                       # single gate EUP push
        # sigmoid(x) == 0.5 * (tanh(0.5*x) + 1)
        act = jnp.where(g_mask, th, 0.5 * (th + 1.0))          # [Bp, 4H]
        i_g = act[:, 0 * H:1 * H]
        f_g = act[:, 1 * H:2 * H]
        g_g = act[:, 2 * H:3 * H]
        o_g = act[:, 3 * H:4 * H]
        c_new = f_g * c + i_g * g_g
        h_new = o_g * jnp.tanh(c_new)
        return h_new, c_new

    zeros = jnp.zeros((Bp, H), jnp.float32)
    h0, c0, h1, c1 = zeros, zeros, zeros, zeros
    h1_steps = []

    # Fused, fully-unrolled time loop: layer-0 step -> layer-1 step (single fused
    # matmul) -> keep h1 in vregs.
    for t in range(T):
        g0 = g0_all[t * Bp:(t + 1) * Bp, :] + jnp.dot(
            h0, whh0, preferred_element_type=jnp.float32)
        h0, c0 = cell(g0, c0)
        # TODO(synk): inter-layer dropout omitted (eval-mode identity).
        h01 = jnp.concatenate([h0, h1], axis=-1)               # [Bp, 2H] lane concat
        g1 = jnp.dot(h01, w1cat, preferred_element_type=jnp.float32) + b1b
        h1, c1 = cell(g1, c1)
        h1_steps.append(h1)

    # ---- Epilogue: LayerNorm + FC over the whole sequence at once (one MXU call,
    # single lane-dense [T*Bp, Vp] store).  h1 never touched VMEM.
    h_all = jnp.concatenate(h1_steps, axis=0)                  # [T*Bp, H]
    mu = jnp.mean(h_all, axis=-1, keepdims=True)
    var = jnp.mean((h_all - mu) ** 2, axis=-1, keepdims=True)
    x_n = (h_all - mu) * lax.rsqrt(var + 1e-5)                 # eps matches PyTorch
    y = x_n * gamma_ref[...] + beta_ref[...]
    # TODO(synk): pre-fc dropout omitted (eval-mode identity).
    out_ref[...] = (
        jnp.dot(y, fcw_ref[...], preferred_element_type=jnp.float32)
        + fcb_ref[...]
    )


def prepare_params(params):
    """One-time parameter preparation (fold, concat, pad).  NOT per-call."""
    V = params["fc_w"].shape[1]
    Vp = ((V + 127) // 128) * 128
    return dict(
        # Fold embedding gather with layer-0 input projection + bias.
        emb_proj=(params["embedding"] @ params["wih0"] + params["b0"]).astype(jnp.float32),
        whh0=params["whh0"].astype(jnp.float32),
        w1cat=jnp.concatenate([params["wih1"], params["whh1"]], axis=0).astype(jnp.float32),
        b1=params["b1"].astype(jnp.float32),
        ln_gamma=params["ln_gamma"].astype(jnp.float32),
        ln_beta=params["ln_beta"].astype(jnp.float32),
        fc_w=jnp.pad(params["fc_w"], ((0, 0), (0, Vp - V))).astype(jnp.float32),
        fc_b=jnp.pad(params["fc_b"], ((0, 0), (0, Vp - V))).astype(jnp.float32),
    )


@functools.partial(jax.jit, static_argnames=("batch", "seq_len", "vocab"))
def password_generator_forward(tokens, prepped, *, batch, seq_len, vocab):
    """tokens: int32 [B, T] -> logits f32 [B, T, V] (matches PyTorch forward)."""
    B, T, V = batch, seq_len, vocab
    Bp = 8                                                     # sublane-granule pad
    H = prepped["whh0"].shape[0]
    Vp = prepped["fc_w"].shape[1]

    vmem = pl.BlockSpec(memory_space=pltpu.MemorySpace.VMEM)
    smem = pl.BlockSpec(memory_space=pltpu.MemorySpace.SMEM)

    out = pl.pallas_call(
        functools.partial(
            password_lstm_fused_kernel, seq_len=T, batch=B, batch_pad=Bp),
        out_shape=jax.ShapeDtypeStruct((T * Bp, Vp), jnp.float32),
        in_specs=[smem] + [vmem] * 8,
        out_specs=vmem,
        scratch_shapes=[pltpu.VMEM((T * Bp, 4 * H), jnp.float32)],
        cost_estimate=pl.CostEstimate(
            flops=2_100_000, transcendentals=20_544, bytes_accessed=132_416),
    )(
        tokens,
        prepped["emb_proj"], prepped["whh0"], prepped["w1cat"], prepped["b1"],
        prepped["ln_gamma"], prepped["ln_beta"],
        prepped["fc_w"], prepped["fc_b"],
    )
    logits = out.reshape(T, Bp, Vp)[:, :B, :V]                 # drop pad rows/lanes
    return jnp.transpose(logits, (1, 0, 2))                    # [B, T, V]


def reference_forward(tokens, params):
    """Pure-JAX reference mirroring PyTorch eval-mode semantics."""
    emb = jnp.take(params["embedding"], tokens, axis=0)        # [B, T, E]
    H = params["whh0"].shape[0]

    def layer(x_btf, wih, whh, b):
        B = x_btf.shape[0]

        def step(carry, x_t):
            h, c = carry
            gates = x_t @ wih + h @ whh + b
            i = jax.nn.sigmoid(gates[:, :H])
            f = jax.nn.sigmoid(gates[:, H:2 * H])
            g = jnp.tanh(gates[:, 2 * H:3 * H])
            o = jax.nn.sigmoid(gates[:, 3 * H:])
            c = f * c + i * g
            h = o * jnp.tanh(c)
            return (h, c), h

        init = (jnp.zeros((B, H), jnp.float32), jnp.zeros((B, H), jnp.float32))
        _, hs = lax.scan(step, init, jnp.transpose(x_btf, (1, 0, 2)))
        return jnp.transpose(hs, (1, 0, 2))

    h1 = layer(emb, params["wih0"], params["whh0"], params["b0"][0])
    h2 = layer(h1, params["wih1"], params["whh1"], params["b1"][0])
    mu = jnp.mean(h2, -1, keepdims=True)
    var = jnp.mean((h2 - mu) ** 2, -1, keepdims=True)
    xn = (h2 - mu) / jnp.sqrt(var + 1e-5)
    y = xn * params["ln_gamma"][0] + params["ln_beta"][0]
    return y @ params["fc_w"] + params["fc_b"][0]


if __name__ == "__main__":
    VOCAB, EMBED, HIDDEN, NUM_LAYERS = 64, 32, 32, 2
    B, T = 2, 8

    key = jax.random.PRNGKey(0)
    keys = jax.random.split(key, 12)

    def u(k, shape, scale=0.1):
        return jax.random.uniform(k, shape, jnp.float32, -1.0, 1.0) * scale

    params = dict(
        embedding=u(keys[0], (VOCAB, EMBED)),
        wih0=u(keys[1], (EMBED, 4 * HIDDEN)),
        whh0=u(keys[2], (HIDDEN, 4 * HIDDEN)),
        b0=u(keys[3], (1, 4 * HIDDEN)),
        wih1=u(keys[4], (HIDDEN, 4 * HIDDEN)),
        whh1=u(keys[5], (HIDDEN, 4 * HIDDEN)),
        b1=u(keys[6], (1, 4 * HIDDEN)),
        ln_gamma=jnp.ones((1, HIDDEN), jnp.float32),
        ln_beta=jnp.zeros((1, HIDDEN), jnp.float32),
        fc_w=u(keys[7], (HIDDEN, VOCAB)),
        fc_b=u(keys[8], (1, VOCAB)),
    )

    tokens = jax.random.randint(keys[9], (B, T), 0, VOCAB, dtype=jnp.int32)

    prepped = prepare_params(params)                           # one-time prep
    jax.block_until_ready(prepped)

    logits = password_generator_forward(
        tokens, prepped, batch=B, seq_len=T, vocab=VOCAB)
    jax.block_until_ready(logits)

    ref = reference_forward(tokens, params)
    assert logits.shape == (B, T, VOCAB)
    assert jnp.allclose(logits, ref, atol=1e-4, rtol=1e-4)
    print("KERNEL_OK")
</pallas_src>

<mosaic_0001>
module attributes {stable_mosaic.version = 11 : i64} {
  func.func @password_lstm_fused_kernel(%arg0: memref<2x8xi32, #tpu.memory_space<smem>>, %arg1: memref<64x128xf32, #tpu.memory_space<vmem>>, %arg2: memref<32x128xf32, #tpu.memory_space<vmem>>, %arg3: memref<64x128xf32, #tpu.memory_space<vmem>>, %arg4: memref<1x128xf32, #tpu.memory_space<vmem>>, %arg5: memref<1x32xf32, #tpu.memory_space<vmem>>, %arg6: memref<1x32xf32, #tpu.memory_space<vmem>>, %arg7: memref<32x128xf32, #tpu.memory_space<vmem>>, %arg8: memref<1x128xf32, #tpu.memory_space<vmem>>, %arg9: memref<64x128xf32, #tpu.memory_space<vmem>>, %arg10: memref<64x128xf32, #tpu.memory_space<vmem>>) attributes {dimension_semantics = [], scalar_prefetch = 0 : i64, scratch_operands = 1 : i64, tpu.core_type = #tpu.core_type<tc>} {
    %cst = arith.constant 0.000000e+00 : f32
    %0 = vector.broadcast %cst : f32 to vector<64x128xf32>
    %c0 = arith.constant 0 : index
    %c0_0 = arith.constant 0 : index
    %1 = vector.load %arg10[%c0, %c0_0] : memref<64x128xf32, #tpu.memory_space<vmem>>, vector<64x128xf32>
    tpu.vector_store %arg10[%c0, %c0_0], %0 {strides = array<i32>} : memref<64x128xf32, #tpu.memory_space<vmem>>, vector<64x128xf32>,
    %c0_1 = arith.constant 0 : index
    %c0_2 = arith.constant 0 : index
    %2 = memref.load %arg0[%c0_1, %c0_2] : memref<2x8xi32, #tpu.memory_space<smem>>
    %3 = arith.index_cast %2 : i32 to index
    %c0_3 = arith.constant 0 : index
    %4 = vector.load %arg1[%3, %c0_3] : memref<64x128xf32, #tpu.memory_space<vmem>>, vector<1x128xf32>
    %c0_4 = arith.constant 0 : index
    %c0_5 = arith.constant 0 : index
    %5 = vector.load %arg10[%c0_4, %c0_5] : memref<64x128xf32, #tpu.memory_space<vmem>>, vector<1x128xf32>
    tpu.vector_store %arg10[%c0_4, %c0_5], %4 {strides = array<i32>} : memref<64x128xf32, #tpu.memory_space<vmem>>, vector<1x128xf32>,
    %c1 = arith.constant 1 : index
    %c0_6 = arith.constant 0 : index
    %6 = memref.load %arg0[%c1, %c0_6] : memref<2x8xi32, #tpu.memory_space<smem>>
    %7 = arith.index_cast %6 : i32 to index
    %c0_7 = arith.constant 0 : index
    %8 = vector.load %arg1[%7, %c0_7] : memref<64x128xf32, #tpu.memory_space<vmem>>, vector<1x128xf32>
    %c1_8 = arith.constant 1 : index
    %c0_9 = arith.constant 0 : index
    %9 = vector.load %arg10[%c1_8, %c0_9] : memref<64x128xf32, #tpu.memory_space<vmem>>, vector<1x128xf32>
    tpu.vector_store %arg10[%c1_8, %c0_9], %8 {strides = array<i32>} : memref<64x128xf32, #tpu.memory_space<vmem>>, vector<1x128xf32>,
    %c0_10 = arith.constant 0 : index
    %c1_11 = arith.constant 1 : index
    %10 = memref.load %arg0[%c0_10, %c1_11] : memref<2x8xi32, #tpu.memory_space<smem>>
    %11 = arith.index_cast %10 : i32 to index
    %c0_12 = arith.constant 0 : index
    %12 = vector.load %arg1[%11, %c0_12] : memref<64x128xf32, #tpu.memory_space<vmem>>, vector<1x128xf32>
    %c8 = arith.constant 8 : index
    %c0_13 = arith.constant 0 : index
    %13 = vector.load %arg10[%c8, %c0_13] : memref<64x128xf32, #tpu.memory_space<vmem>>, vector<1x128xf32>
    tpu.vector_store %arg10[%c8, %c0_13], %12 {strides = array<i32>} : memref<64x128xf32, #tpu.memory_space<vmem>>, vector<1x128xf32>,
    %c1_14 = arith.constant 1 : index
    %c1_15 = arith.constant 1 : index
    %14 = memref.load %arg0[%c1_14, %c1_15] : memref<2x8xi32, #tpu.memory_space<smem>>
    %15 = arith.index_cast %14 : i32 to index
    %c0_16 = arith.constant 0 : index
    %16 = vector.load %arg1[%15, %c0_16] : memref<64x128xf32, #tpu.memory_space<vmem>>, vector<1x128xf32>
    %c9 = arith.constant 9 : index
    %c0_17 = arith.constant 0 : index
    %17 = vector.load %arg10[%c9, %c0_17] : memref<64x128xf32, #tpu.memory_space<vmem>>, vector<1x128xf32>
    tpu.vector_store %arg10[%c9, %c0_17], %16 {strides = array<i32>} : memref<64x128xf32, #tpu.memory_space<vmem>>, vector<1x128xf32>,
    %c0_18 = arith.constant 0 : index
    %c2 = arith.constant 2 : index
    %18 = memref.load %arg0[%c0_18, %c2] : memref<2x8xi32, #tpu.memory_space<smem>>
    %19 = arith.index_cast %18 : i32 to index
    %c0_19 = arith.constant 0 : index
    %20 = vector.load %arg1[%19, %c0_19] : memref<64x128xf32, #tpu.memory_space<vmem>>, vector<1x128xf32>
    %c16 = arith.constant 16 : index
    %c0_20 = arith.constant 0 : index
    %21 = vector.load %arg10[%c16, %c0_20] : memref<64x128xf32, #tpu.memory_space<vmem>>, vector<1x128xf32>
    tpu.vector_store %arg10[%c16, %c0_20], %20 {strides = array<i32>} : memref<64x128xf32, #tpu.memory_space<vmem>>, vector<1x128xf32>,
    %c1_21 = arith.constant 1 : index
    %c2_22 = arith.constant 2 : index
    %22 = memref.load %arg0[%c1_21, %c2_22] : memref<2x8xi32, #tpu.memory_space<smem>>
    %23 = arith.index_cast %22 : i32 to index
    %c0_23 = arith.constant 0 : index
    %24 = vector.load %arg1[%23, %c0_23] : memref<64x128xf32, #tpu.memory_space<vmem>>, vector<1x128xf32>
    %c17 = arith.constant 17 : index
    %c0_24 = arith.constant 0 : index
    %25 = vector.load %arg10[%c17, %c0_24] : memref<64x128xf32, #tpu.memory_space<vmem>>, vector<1x128xf32>
    tpu.vector_store %arg10[%c17, %c0_24], %24 {strides = array<i32>} : memref<64x128xf32, #tpu.memory_space<vmem>>, vector<1x128xf32>,
    %c0_25 = arith.constant 0 : index
    %c3 = arith.constant 3 : index
    %26 = memref.load %arg0[%c0_25, %c3] : memref<2x8xi32, #tpu.memory_space<smem>>
    %27 = arith.index_cast %26 : i32 to index
    %c0_26 = arith.constant 0 : index
    %28 = vector.load %arg1[%27, %c0_26] : memref<64x128xf32, #tpu.memory_space<vmem>>, vector<1x128xf32>
    %c24 = arith.constant 24 : index
    %c0_27 = arith.constant 0 : index
    %29 = vector.load %arg10[%c24, %c0_27] : memref<64x128xf32, #tpu.memory_space<vmem>>, vector<1x128xf32>
    tpu.vector_store %arg10[%c24, %c0_27], %28 {strides = array<i32>} : memref<64x128xf32, #tpu.memory_space<vmem>>, vector<1x128xf32>,
    %c1_28 = arith.constant 1 : index
    %c3_29 = arith.constant 3 : index
    %30 = memref.load %arg0[%c1_28, %c3_29] : memref<2x8xi32, #tpu.memory_space<smem>>
    %31 = arith.index_cast %30 : i32 to index
    %c0_30 = arith.constant 0 : index
    %32 = vector.load %arg1[%31, %c0_30] : memref<64x128xf32, #tpu.memory_space<vmem>>, vector<1x128xf32>
    %c25 = arith.constant 25 : index
    %c0_31 = arith.constant 0 : index
    %33 = vector.load %arg10[%c25, %c0_31] : memref<64x128xf32, #tpu.memory_space<vmem>>, vector<1x128xf32>
    tpu.vector_store %arg10[%c25, %c0_31], %32 {strides = array<i32>} : memref<64x128xf32, #tpu.memory_space<vmem>>, vector<1x128xf32>,
    %c0_32 = arith.constant 0 : index
    %c4 = arith.constant 4 : index
    %34 = memref.load %arg0[%c0_32, %c4] : memref<2x8xi32, #tpu.memory_space<smem>>
    %35 = arith.index_cast %34 : i32 to index
    %c0_33 = arith.constant 0 : index
    %36 = vector.load %arg1[%35, %c0_33] : memref<64x128xf32, #tpu.memory_space<vmem>>, vector<1x128xf32>
    %c32 = arith.constant 32 : index
    %c0_34 = arith.constant 0 : index
    %37 = vector.load %arg10[%c32, %c0_34] : memref<64x128xf32, #tpu.memory_space<vmem>>, vector<1x128xf32>
    tpu.vector_store %arg10[%c32, %c0_34], %36 {strides = array<i32>} : memref<64x128xf32, #tpu.memory_space<vmem>>, vector<1x128xf32>,
    %c1_35 = arith.constant 1 : index
    %c4_36 = arith.constant 4 : index
    %38 = memref.load %arg0[%c1_35, %c4_36] : memref<2x8xi32, #tpu.memory_space<smem>>
    %39 = arith.index_cast %38 : i32 to index
    %c0_37 = arith.constant 0 : index
    %40 = vector.load %arg1[%39, %c0_37] : memref<64x128xf32, #tpu.memory_space<vmem>>, vector<1x128xf32>
    %c33 = arith.constant 33 : index
    %c0_38 = arith.constant 0 : index
    %41 = vector.load %arg10[%c33, %c0_38] : memref<64x128xf32, #tpu.memory_space<vmem>>, vector<1x128xf32>
    tpu.vector_store %arg10[%c33, %c0_38], %40 {strides = array<i32>} : memref<64x128xf32, #tpu.memory_space<vmem>>, vector<1x128xf32>,
    %c0_39 = arith.constant 0 : index
    %c5 = arith.constant 5 : index
    %42 = memref.load %arg0[%c0_39, %c5] : memref<2x8xi32, #tpu.memory_space<smem>>
    %43 = arith.index_cast %42 : i32 to index
    %c0_40 = arith.constant 0 : index
    %44 = vector.load %arg1[%43, %c0_40] : memref<64x128xf32, #tpu.memory_space<vmem>>, vector<1x128xf32>
    %c40 = arith.constant 40 : index
    %c0_41 = arith.constant 0 : index
    %45 = vector.load %arg10[%c40, %c0_41] : memref<64x128xf32, #tpu.memory_space<vmem>>, vector<1x128xf32>
    tpu.vector_store %arg10[%c40, %c0_41], %44 {strides = array<i32>} : memref<64x128xf32, #tpu.memory_space<vmem>>, vector<1x128xf32>,
    %c1_42 = arith.constant 1 : index
    %c5_43 = arith.constant 5 : index
    %46 = memref.load %arg0[%c1_42, %c5_43] : memref<2x8xi32, #tpu.memory_space<smem>>
    %47 = arith.index_cast %46 : i32 to index
    %c0_44 = arith.constant 0 : index
    %48 = vector.load %arg1[%47, %c0_44] : memref<64x128xf32, #tpu.memory_space<vmem>>, vector<1x128xf32>
    %c41 = arith.constant 41 : index
    %c0_45 = arith.constant 0 : index
    %49 = vector.load %arg10[%c41, %c0_45] : memref<64x128xf32, #tpu.memory_space<vmem>>, vector<1x128xf32>
    tpu.vector_store %arg10[%c41, %c0_45], %48 {strides = array<i32>} : memref<64x128xf32, #tpu.memory_space<vmem>>, vector<1x128xf32>,
    %c0_46 = arith.constant 0 : index
    %c6 = arith.constant 6 : index
    %50 = memref.load %arg0[%c0_46, %c6] : memref<2x8xi32, #tpu.memory_space<smem>>
    %51 = arith.index_cast %50 : i32 to index
    %c0_47 = arith.constant 0 : index
    %52 = vector.load %arg1[%51, %c0_47] : memref<64x128xf32, #tpu.memory_space<vmem>>, vector<1x128xf32>
    %c48 = arith.constant 48 : index
    %c0_48 = arith.constant 0 : index
    %53 = vector.load %arg10[%c48, %c0_48] : memref<64x128xf32, #tpu.memory_space<vmem>>, vector<1x128xf32>
    tpu.vector_store %arg10[%c48, %c0_48], %52 {strides = array<i32>} : memref<64x128xf32, #tpu.memory_space<vmem>>, vector<1x128xf32>,
    %c1_49 = arith.constant 1 : index
    %c6_50 = arith.constant 6 : index
    %54 = memref.load %arg0[%c1_49, %c6_50] : memref<2x8xi32, #tpu.memory_space<smem>>
    %55 = arith.index_cast %54 : i32 to index
    %c0_51 = arith.constant 0 : index
    %56 = vector.load %arg1[%55, %c0_51] : memref<64x128xf32, #tpu.memory_space<vmem>>, vector<1x128xf32>
    %c49 = arith.constant 49 : index
    %c0_52 = arith.constant 0 : index
    %57 = vector.load %arg10[%c49, %c0_52] : memref<64x128xf32, #tpu.memory_space<vmem>>, vector<1x128xf32>
    tpu.vector_store %arg10[%c49, %c0_52], %56 {strides = array<i32>} : memref<64x128xf32, #tpu.memory_space<vmem>>, vector<1x128xf32>,
    %c0_53 = arith.constant 0 : index
    %c7 = arith.constant 7 : index
    %58 = memref.load %arg0[%c0_53, %c7] : memref<2x8xi32, #tpu.memory_space<smem>>
    %59 = arith.index_cast %58 : i32 to index
    %c0_54 = arith.constant 0 : index
    %60 = vector.load %arg1[%59, %c0_54] : memref<64x128xf32, #tpu.memory_space<vmem>>, vector<1x128xf32>
    %c56 = arith.constant 56 : index
    %c0_55 = arith.constant 0 : index
    %61 = vector.load %arg10[%c56, %c0_55] : memref<64x128xf32, #tpu.memory_space<vmem>>, vector<1x128xf32>
    tpu.vector_store %arg10[%c56, %c0_55], %60 {strides = array<i32>} : memref<64x128xf32, #tpu.memory_space<vmem>>, vector<1x128xf32>,
    %c1_56 = arith.constant 1 : index
    %c7_57 = arith.constant 7 : index
    %62 = memref.load %arg0[%c1_56, %c7_57] : memref<2x8xi32, #tpu.memory_space<smem>>
    %63 = arith.index_cast %62 : i32 to index
    %c0_58 = arith.constant 0 : index
    %64 = vector.load %arg1[%63, %c0_58] : memref<64x128xf32, #tpu.memory_space<vmem>>, vector<1x128xf32>
    %c57 = arith.constant 57 : index
    %c0_59 = arith.constant 0 : index
    %65 = vector.load %arg10[%c57, %c0_59] : memref<64x128xf32, #tpu.memory_space<vmem>>, vector<1x128xf32>
    tpu.vector_store %arg10[%c57, %c0_59], %64 {strides = array<i32>} : memref<64x128xf32, #tpu.memory_space<vmem>>, vector<1x128xf32>,
    %c0_60 = arith.constant 0 : index
    %c0_61 = arith.constant 0 : index
    %66 = vector.load %arg10[%c0_60, %c0_61] : memref<64x128xf32, #tpu.memory_space<vmem>>, vector<64x128xf32>
    %c0_62 = arith.constant 0 : index
    %c0_63 = arith.constant 0 : index
    %67 = vector.load %arg2[%c0_62, %c0_63] : memref<32x128xf32, #tpu.memory_space<vmem>>, vector<32x128xf32>
    %c0_64 = arith.constant 0 : index
    %c0_65 = arith.constant 0 : index
    %68 = vector.load %arg3[%c0_64, %c0_65] : memref<64x128xf32, #tpu.memory_space<vmem>>, vector<64x128xf32>
    %c0_66 = arith.constant 0 : index
    %c0_67 = arith.constant 0 : index
    %69 = vector.load %arg4[%c0_66, %c0_67] : memref<1x128xf32, #tpu.memory_space<vmem>>, vector<1x128xf32>
    %70 = vector.shape_cast %69 : vector<1x128xf32> to vector<1x128xf32>
    %71 = vector.broadcast %70 : vector<1x128xf32> to vector<8x128xf32>
    %72 = tpu.iota {dimensions = array<i32: 1>} : vector<8x128xi32>
    %c64_i32 = arith.constant 64 : i32
    %73 = vector.broadcast %c64_i32 : i32 to vector<8x128xi32>
    %74 = arith.cmpi sge, %72, %73 : vector<8x128xi32>
    %c96_i32 = arith.constant 96 : i32
    %75 = vector.broadcast %c96_i32 : i32 to vector<8x128xi32>
    %76 = arith.cmpi slt, %72, %75 : vector<8x128xi32>
    %77 = arith.andi %74, %76 : vector<8x128xi1>
    %cst_68 = arith.constant 1.000000e+00 : f32
    %cst_69 = arith.constant 5.000000e-01 : f32
    %78 = vector.broadcast %cst_68 : f32 to vector<8x128xf32>
    %79 = vector.broadcast %cst_69 : f32 to vector<8x128xf32>
    %80 = arith.select %77, %78, %79 : vector<8x128xi1>, vector<8x128xf32>
    %cst_70 = arith.constant 0.000000e+00 : f32
    %81 = vector.broadcast %cst_70 : f32 to vector<8x32xf32>
    %82 = vector.extract_strided_slice %66 {offsets = [0, 0], sizes = [8, 128], strides = [1, 1]} : vector<64x128xf32> to vector<8x128xf32>
    %cst_71 = arith.constant dense<0.000000e+00> : vector<8x128xf32>
    %83 = tpu.matmul %81, %67, %cst_71 {dimension_numbers = #tpu.dot_dimension_numbers<[1], [0], [0], [1], [0, 0, 1, 1], [], []>} : vector<8x32xf32>, vector<32x128xf32>, vector<8x128xf32> -> vector<8x128xf32>
    %84 = arith.addf %82, %83 : vector<8x128xf32>
    %85 = arith.mulf %84, %80 : vector<8x128xf32>
    %86 = math.tanh %85 : vector<8x128xf32>
    %cst_72 = arith.constant 1.000000e+00 : f32
    %87 = vector.broadcast %cst_72 : f32 to vector<8x128xf32>
    %88 = arith.addf %86, %87 : vector<8x128xf32>
    %cst_73 = arith.constant 5.000000e-01 : f32
    %89 = vector.broadcast %cst_73 : f32 to vector<8x128xf32>
    %90 = arith.mulf %89, %88 : vector<8x128xf32>
    %91 = arith.select %77, %86, %90 : vector<8x128xi1>, vector<8x128xf32>
    %92 = vector.extract_strided_slice %91 {offsets = [0, 0], sizes = [8, 32], strides = [1, 1]} : vector<8x128xf32> to vector<8x32xf32>
    %93 = vector.extract_strided_slice %91 {offsets = [0, 32], sizes = [8, 32], strides = [1, 1]} : vector<8x128xf32> to vector<8x32xf32>
    %94 = vector.extract_strided_slice %91 {offsets = [0, 64], sizes = [8, 32], strides = [1, 1]} : vector<8x128xf32> to vector<8x32xf32>
    %95 = vector.extract_strided_slice %91 {offsets = [0, 96], sizes = [8, 32], strides = [1, 1]} : vector<8x128xf32> to vector<8x32xf32>
    %96 = arith.mulf %93, %81 : vector<8x32xf32>
    %97 = arith.mulf %92, %94 : vector<8x32xf32>
    %98 = arith.addf %96, %97 : vector<8x32xf32>
    %99 = math.tanh %98 : vector<8x32xf32>
    %100 = arith.mulf %95, %99 : vector<8x32xf32>
    %101 = tpu.concatenate %100, %81 in 1 : vector<8x32xf32>, vector<8x32xf32> -> vector<8x64xf32>
    %cst_74 = arith.constant dense<0.000000e+00> : vector<8x128xf32>
    %102 = tpu.matmul %101, %68, %cst_74 {dimension_numbers = #tpu.dot_dimension_numbers<[1], [0], [0], [1], [0, 0, 1, 1], [], []>} : vector<8x64xf32>, vector<64x128xf32>, vector<8x128xf32> -> vector<8x128xf32>
    %103 = arith.addf %102, %71 : vector<8x128xf32>
    %104 = arith.mulf %103, %80 : vector<8x128xf32>
    %105 = math.tanh %104 : vector<8x128xf32>
    %cst_75 = arith.constant 1.000000e+00 : f32
    %106 = vector.broadcast %cst_75 : f32 to vector<8x128xf32>
    %107 = arith.addf %105, %106 : vector<8x128xf32>
    %cst_76 = arith.constant 5.000000e-01 : f32
    %108 = vector.broadcast %cst_76 : f32 to vector<8x128xf32>
    %109 = arith.mulf %108, %107 : vector<8x128xf32>
    %110 = arith.select %77, %105, %109 : vector<8x128xi1>, vector<8x128xf32>
    %111 = vector.extract_strided_slice %110 {offsets = [0, 0], sizes = [8, 32], strides = [1, 1]} : vector<8x128xf32> to vector<8x32xf32>
    %112 = vector.extract_strided_slice %110 {offsets = [0, 32], sizes = [8, 32], strides = [1, 1]} : vector<8x128xf32> to vector<8x32xf32>
    %113 = vector.extract_strided_slice %110 {offsets = [0, 64], sizes = [8, 32], strides = [1, 1]} : vector<8x128xf32> to vector<8x32xf32>
    %114 = vector.extract_strided_slice %110 {offsets = [0, 96], sizes = [8, 32], strides = [1, 1]} : vector<8x128xf32> to vector<8x32xf32>
    %115 = arith.mulf %112, %81 : vector<8x32xf32>
    %116 = arith.mulf %111, %113 : vector<8x32xf32>
    %117 = arith.addf %115, %116 : vector<8x32xf32>
    %118 = math.tanh %117 : vector<8x32xf32>
    %119 = arith.mulf %114, %118 : vector<8x32xf32>
    %120 = vector.extract_strided_slice %66 {offsets = [8, 0], sizes = [8, 128], strides = [1, 1]} : vector<64x128xf32> to vector<8x128xf32>
    %cst_77 = arith.constant dense<0.000000e+00> : vector<8x128xf32>
    %121 = tpu.matmul %100, %67, %cst_77 {dimension_numbers = #tpu.dot_dimension_numbers<[1], [0], [0], [1], [0, 0, 1, 1], [], []>} : vector<8x32xf32>, vector<32x128xf32>, vector<8x128xf32> -> vector<8x128xf32>
    %122 = arith.addf %120, %121 : vector<8x128xf32>
    %123 = arith.mulf %122, %80 : vector<8x128xf32>
    %124 = math.tanh %123 : vector<8x128xf32>
    %cst_78 = arith.constant 1.000000e+00 : f32
    %125 = vector.broadcast %cst_78 : f32 to vector<8x128xf32>
    %126 = arith.addf %124, %125 : vector<8x128xf32>
    %cst_79 = arith.constant 5.000000e-01 : f32
    %127 = vector.broadcast %cst_79 : f32 to vector<8x128xf32>
    %128 = arith.mulf %127, %126 : vector<8x128xf32>
    %129 = arith.select %77, %124, %128 : vector<8x128xi1>, vector<8x128xf32>
    %130 = vector.extract_strided_slice %129 {offsets = [0, 0], sizes = [8, 32], strides = [1, 1]} : vector<8x128xf32> to vector<8x32xf32>
    %131 = vector.extract_strided_slice %129 {offsets = [0, 32], sizes = [8, 32], strides = [1, 1]} : vector<8x128xf32> to vector<8x32xf32>
    %132 = vector.extract_strided_slice %129 {offsets = [0, 64], sizes = [8, 32], strides = [1, 1]} : vector<8x128xf32> to vector<8x32xf32>
    %133 = vector.extract_strided_slice %129 {offsets = [0, 96], sizes = [8, 32], strides = [1, 1]} : vector<8x128xf32> to vector<8x32xf32>
    %134 = arith.mulf %131, %98 : vector<8x32xf32>
    %135 = arith.mulf %130, %132 : vector<8x32xf32>
    %136 = arith.addf %134, %135 : vector<8x32xf32>
    %137 = math.tanh %136 : vector<8x32xf32>
    %138 = arith.mulf %133, %137 : vector<8x32xf32>
    %139 = tpu.concatenate %138, %119 in 1 : vector<8x32xf32>, vector<8x32xf32> -> vector<8x64xf32>
    %cst_80 = arith.constant dense<0.000000e+00> : vector<8x128xf32>
    %140 = tpu.matmul %139, %68, %cst_80 {dimension_numbers = #tpu.dot_dimension_numbers<[1], [0], [0], [1], [0, 0, 1, 1], [], []>} : vector<8x64xf32>, vector<64x128xf32>, vector<8x128xf32> -> vector<8x128xf32>
    %141 = arith.addf %140, %71 : vector<8x128xf32>
    %142 = arith.mulf %141, %80 : vector<8x128xf32>
    %143 = math.tanh %142 : vector<8x128xf32>
    %cst_81 = arith.constant 1.000000e+00 : f32
    %144 = vector.broadcast %cst_81 : f32 to vector<8x128xf32>
    %145 = arith.addf %143, %144 : vector<8x128xf32>
    %cst_82 = arith.constant 5.000000e-01 : f32
    %146 = vector.broadcast %cst_82 : f32 to vector<8x128xf32>
    %147 = arith.mulf %146, %145 : vector<8x128xf32>
    %148 = arith.select %77, %143, %147 : vector<8x128xi1>, vector<8x128xf32>
    %149 = vector.extract_strided_slice %148 {offsets = [0, 0], sizes = [8, 32], strides = [1, 1]} : vector<8x128xf32> to vector<8x32xf32>
    %150 = vector.extract_strided_slice %148 {offsets = [0, 32], sizes = [8, 32], strides = [1, 1]} : vector<8x128xf32> to vector<8x32xf32>
    %151 = vector.extract_strided_slice %148 {offsets = [0, 64], sizes = [8, 32], strides = [1, 1]} : vector<8x128xf32> to vector<8x32xf32>
    %152 = vector.extract_strided_slice %148 {offsets = [0, 96], sizes = [8, 32], strides = [1, 1]} : vector<8x128xf32> to vector<8x32xf32>
    %153 = arith.mulf %150, %117 : vector<8x32xf32>
    %154 = arith.mulf %149, %151 : vector<8x32xf32>
    %155 = arith.addf %153, %154 : vector<8x32xf32>
    %156 = math.tanh %155 : vector<8x32xf32>
    %157 = arith.mulf %152, %156 : vector<8x32xf32>
    %158 = vector.extract_strided_slice %66 {offsets = [16, 0], sizes = [8, 128], strides = [1, 1]} : vector<64x128xf32> to vector<8x128xf32>
    %cst_83 = arith.constant dense<0.000000e+00> : vector<8x128xf32>
    %159 = tpu.matmul %138, %67, %cst_83 {dimension_numbers = #tpu.dot_dimension_numbers<[1], [0], [0], [1], [0, 0, 1, 1], [], []>} : vector<8x32xf32>, vector<32x128xf32>, vector<8x128xf32> -> vector<8x128xf32>
    %160 = arith.addf %158, %159 : vector<8x128xf32>
    %161 = arith.mulf %160, %80 : vector<8x128xf32>
    %162 = math.tanh %161 : vector<8x128xf32>
    %cst_84 = arith.constant 1.000000e+00 : f32
    %163 = vector.broadcast %cst_84 : f32 to vector<8x128xf32>
    %164 = arith.addf %162, %163 : vector<8x128xf32>
    %cst_85 = arith.constant 5.000000e-01 : f32
    %165 = vector.broadcast %cst_85 : f32 to vector<8x128xf32>
    %166 = arith.mulf %165, %164 : vector<8x128xf32>
    %167 = arith.select %77, %162, %166 : vector<8x128xi1>, vector<8x128xf32>
    %168 = vector.extract_strided_slice %167 {offsets = [0, 0], sizes = [8, 32], strides = [1, 1]} : vector<8x128xf32> to vector<8x32xf32>
    %169 = vector.extract_strided_slice %167 {offsets = [0, 32], sizes = [8, 32], strides = [1, 1]} : vector<8x128xf32> to vector<8x32xf32>
    %170 = vector.extract_strided_slice %167 {offsets = [0, 64], sizes = [8, 32], strides = [1, 1]} : vector<8x128xf32> to vector<8x32xf32>
    %171 = vector.extract_strided_slice %167 {offsets = [0, 96], sizes = [8, 32], strides = [1, 1]} : vector<8x128xf32> to vector<8x32xf32>
    %172 = arith.mulf %169, %136 : vector<8x32xf32>
    %173 = arith.mulf %168, %170 : vector<8x32xf32>
    %174 = arith.addf %172, %173 : vector<8x32xf32>
    %175 = math.tanh %174 : vector<8x32xf32>
    %176 = arith.mulf %171, %175 : vector<8x32xf32>
    %177 = tpu.concatenate %176, %157 in 1 : vector<8x32xf32>, vector<8x32xf32> -> vector<8x64xf32>
    %cst_86 = arith.constant dense<0.000000e+00> : vector<8x128xf32>
    %178 = tpu.matmul %177, %68, %cst_86 {dimension_numbers = #tpu.dot_dimension_numbers<[1], [0], [0], [1], [0, 0, 1, 1], [], []>} : vector<8x64xf32>, vector<64x128xf32>, vector<8x128xf32> -> vector<8x128xf32>
    %179 = arith.addf %178, %71 : vector<8x128xf32>
    %180 = arith.mulf %179, %80 : vector<8x128xf32>
    %181 = math.tanh %180 : vector<8x128xf32>
    %cst_87 = arith.constant 1.000000e+00 : f32
    %182 = vector.broadcast %cst_87 : f32 to vector<8x128xf32>
    %183 = arith.addf %181, %182 : vector<8x128xf32>
    %cst_88 = arith.constant 5.000000e-01 : f32
    %184 = vector.broadcast %cst_88 : f32 to vector<8x128xf32>
    %185 = arith.mulf %184, %183 : vector<8x128xf32>
    %186 = arith.select %77, %181, %185 : vector<8x128xi1>, vector<8x128xf32>
    %187 = vector.extract_strided_slice %186 {offsets = [0, 0], sizes = [8, 32], strides = [1, 1]} : vector<8x128xf32> to vector<8x32xf32>
    %188 = vector.extract_strided_slice %186 {offsets = [0, 32], sizes = [8, 32], strides = [1, 1]} : vector<8x128xf32> to vector<8x32xf32>
    %189 = vector.extract_strided_slice %186 {offsets = [0, 64], sizes = [8, 32], strides = [1, 1]} : vector<8x128xf32> to vector<8x32xf32>
    %190 = vector.extract_strided_slice %186 {offsets = [0, 96], sizes = [8, 32], strides = [1, 1]} : vector<8x128xf32> to vector<8x32xf32>
    %191 = arith.mulf %188, %155 : vector<8x32xf32>
    %192 = arith.mulf %187, %189 : vector<8x32xf32>
    %193 = arith.addf %191, %192 : vector<8x32xf32>
    %194 = math.tanh %193 : vector<8x32xf32>
    %195 = arith.mulf %190, %194 : vector<8x32xf32>
    %196 = vector.extract_strided_slice %66 {offsets = [24, 0], sizes = [8, 128], strides = [1, 1]} : vector<64x128xf32> to vector<8x128xf32>
    %cst_89 = arith.constant dense<0.000000e+00> : vector<8x128xf32>
    %197 = tpu.matmul %176, %67, %cst_89 {dimension_numbers = #tpu.dot_dimension_numbers<[1], [0], [0], [1], [0, 0, 1, 1], [], []>} : vector<8x32xf32>, vector<32x128xf32>, vector<8x128xf32> -> vector<8x128xf32>
    %198 = arith.addf %196, %197 : vector<8x128xf32>
    %199 = arith.mulf %198, %80 : vector<8x128xf32>
    %200 = math.tanh %199 : vector<8x128xf32>
    %cst_90 = arith.constant 1.000000e+00 : f32
    %201 = vector.broadcast %cst_90 : f32 to vector<8x128xf32>
    %202 = arith.addf %200, %201 : vector<8x128xf32>
    %cst_91 = arith.constant 5.000000e-01 : f32
    %203 = vector.broadcast %cst_91 : f32 to vector<8x128xf32>
    %204 = arith.mulf %203, %202 : vector<8x128xf32>
    %205 = arith.select %77, %200, %204 : vector<8x128xi1>, vector<8x128xf32>
    %206 = vector.extract_strided_slice %205 {offsets = [0, 0], sizes = [8, 32], strides = [1, 1]} : vector<8x128xf32> to vector<8x32xf32>
    %207 = vector.extract_strided_slice %205 {offsets = [0, 32], sizes = [8, 32], strides = [1, 1]} : vector<8x128xf32> to vector<8x32xf32>
    %208 = vector.extract_strided_slice %205 {offsets = [0, 64], sizes = [8, 32], strides = [1, 1]} : vector<8x128xf32> to vector<8x32xf32>
    %209 = vector.extract_strided_slice %205 {offsets = [0, 96], sizes = [8, 32], strides = [1, 1]} : vector<8x128xf32> to vector<8x32xf32>
    %210 = arith.mulf %207, %174 : vector<8x32xf32>
    %211 = arith.mulf %206, %208 : vector<8x32xf32>
    %212 = arith.addf %210, %211 : vector<8x32xf32>
    %213 = math.tanh %212 : vector<8x32xf32>
    %214 = arith.mulf %209, %213 : vector<8x32xf32>
    %215 = tpu.concatenate %214, %195 in 1 : vector<8x32xf32>, vector<8x32xf32> -> vector<8x64xf32>
    %cst_92 = arith.constant dense<0.000000e+00> : vector<8x128xf32>
    %216 = tpu.matmul %215, %68, %cst_92 {dimension_numbers = #tpu.dot_dimension_numbers<[1], [0], [0], [1], [0, 0, 1, 1], [], []>} : vector<8x64xf32>, vector<64x128xf32>, vector<8x128xf32> -> vector<8x128xf32>
    %217 = arith.addf %216, %71 : vector<8x128xf32>
    %218 = arith.mulf %217, %80 : vector<8x128xf32>
    %219 = math.tanh %218 : vector<8x128xf32>
    %cst_93 = arith.constant 1.000000e+00 : f32
    %220 = vector.broadcast %cst_93 : f32 to vector<8x128xf32>
    %221 = arith.addf %219, %220 : vector<8x128xf32>
    %cst_94 = arith.constant 5.000000e-01 : f32
    %222 = vector.broadcast %cst_94 : f32 to vector<8x128xf32>
    %223 = arith.mulf %222, %221 : vector<8x128xf32>
    %224 = arith.select %77, %219, %223 : vector<8x128xi1>, vector<8x128xf32>
    %225 = vector.extract_strided_slice %224 {offsets = [0, 0], sizes = [8, 32], strides = [1, 1]} : vector<8x128xf32> to vector<8x32xf32>
    %226 = vector.extract_strided_slice %224 {offsets = [0, 32], sizes = [8, 32], strides = [1, 1]} : vector<8x128xf32> to vector<8x32xf32>
    %227 = vector.extract_strided_slice %224 {offsets = [0, 64], sizes = [8, 32], strides = [1, 1]} : vector<8x128xf32> to vector<8x32xf32>
    %228 = vector.extract_strided_slice %224 {offsets = [0, 96], sizes = [8, 32], strides = [1, 1]} : vector<8x128xf32> to vector<8x32xf32>
    %229 = arith.mulf %226, %193 : vector<8x32xf32>
    %230 = arith.mulf %225, %227 : vector<8x32xf32>
    %231 = arith.addf %229, %230 : vector<8x32xf32>
    %232 = math.tanh %231 : vector<8x32xf32>
    %233 = arith.mulf %228, %232 : vector<8x32xf32>
    %234 = vector.extract_strided_slice %66 {offsets = [32, 0], sizes = [8, 128], strides = [1, 1]} : vector<64x128xf32> to vector<8x128xf32>
    %cst_95 = arith.constant dense<0.000000e+00> : vector<8x128xf32>
    %235 = tpu.matmul %214, %67, %cst_95 {dimension_numbers = #tpu.dot_dimension_numbers<[1], [0], [0], [1], [0, 0, 1, 1], [], []>} : vector<8x32xf32>, vector<32x128xf32>, vector<8x128xf32> -> vector<8x128xf32>
    %236 = arith.addf %234, %235 : vector<8x128xf32>
    %237 = arith.mulf %236, %80 : vector<8x128xf32>
    %238 = math.tanh %237 : vector<8x128xf32>
    %cst_96 = arith.constant 1.000000e+00 : f32
    %239 = vector.broadcast %cst_96 : f32 to vector<8x128xf32>
    %240 = arith.addf %238, %239 : vector<8x128xf32>
    %cst_97 = arith.constant 5.000000e-01 : f32
    %241 = vector.broadcast %cst_97 : f32 to vector<8x128xf32>
    %242 = arith.mulf %241, %240 : vector<8x128xf32>
    %243 = arith.select %77, %238, %242 : vector<8x128xi1>, vector<8x128xf32>
    %244 = vector.extract_strided_slice %243 {offsets = [0, 0], sizes = [8, 32], strides = [1, 1]} : vector<8x128xf32> to vector<8x32xf32>
    %245 = vector.extract_strided_slice %243 {offsets = [0, 32], sizes = [8, 32], strides = [1, 1]} : vector<8x128xf32> to vector<8x32xf32>
    %246 = vector.extract_strided_slice %243 {offsets = [0, 64], sizes = [8, 32], strides = [1, 1]} : vector<8x128xf32> to vector<8x32xf32>
    %247 = vector.extract_strided_slice %243 {offsets = [0, 96], sizes = [8, 32], strides = [1, 1]} : vector<8x128xf32> to vector<8x32xf32>
    %248 = arith.mulf %245, %212 : vector<8x32xf32>
    %249 = arith.mulf %244, %246 : vector<8x32xf32>
    %250 = arith.addf %248, %249 : vector<8x32xf32>
    %251 = math.tanh %250 : vector<8x32xf32>
    %252 = arith.mulf %247, %251 : vector<8x32xf32>
    %253 = tpu.concatenate %252, %233 in 1 : vector<8x32xf32>, vector<8x32xf32> -> vector<8x64xf32>
    %cst_98 = arith.constant dense<0.000000e+00> : vector<8x128xf32>
    %254 = tpu.matmul %253, %68, %cst_98 {dimension_numbers = #tpu.dot_dimension_numbers<[1], [0], [0], [1], [0, 0, 1, 1], [], []>} : vector<8x64xf32>, vector<64x128xf32>, vector<8x128xf32> -> vector<8x128xf32>
    %255 = arith.addf %254, %71 : vector<8x128xf32>
    %256 = arith.mulf %255, %80 : vector<8x128xf32>
    %257 = math.tanh %256 : vector<8x128xf32>
    %cst_99 = arith.constant 1.000000e+00 : f32
    %258 = vector.broadcast %cst_99 : f32 to vector<8x128xf32>
    %259 = arith.addf %257, %258 : vector<8x128xf32>
    %cst_100 = arith.constant 5.000000e-01 : f32
    %260 = vector.broadcast %cst_100 : f32 to vector<8x128xf32>
    %261 = arith.mulf %260, %259 : vector<8x128xf32>
    %262 = arith.select %77, %257, %261 : vector<8x128xi1>, vector<8x128xf32>
    %263 = vector.extract_strided_slice %262 {offsets = [0, 0], sizes = [8, 32], strides = [1, 1]} : vector<8x128xf32> to vector<8x32xf32>
    %264 = vector.extract_strided_slice %262 {offsets = [0, 32], sizes = [8, 32], strides = [1, 1]} : vector<8x128xf32> to vector<8x32xf32>
    %265 = vector.extract_strided_slice %262 {offsets = [0, 64], sizes = [8, 32], strides = [1, 1]} : vector<8x128xf32> to vector<8x32xf32>
    %266 = vector.extract_strided_slice %262 {offsets = [0, 96], sizes = [8, 32], strides = [1, 1]} : vector<8x128xf32> to vector<8x32xf32>
    %267 = arith.mulf %264, %231 : vector<8x32xf32>
    %268 = arith.mulf %263, %265 : vector<8x32xf32>
    %269 = arith.addf %267, %268 : vector<8x32xf32>
    %270 = math.tanh %269 : vector<8x32xf32>
    %271 = arith.mulf %266, %270 : vector<8x32xf32>
    %272 = vector.extract_strided_slice %66 {offsets = [40, 0], sizes = [8, 128], strides = [1, 1]} : vector<64x128xf32> to vector<8x128xf32>
    %cst_101 = arith.constant dense<0.000000e+00> : vector<8x128xf32>
    %273 = tpu.matmul %252, %67, %cst_101 {dimension_numbers = #tpu.dot_dimension_numbers<[1], [0], [0], [1], [0, 0, 1, 1], [], []>} : vector<8x32xf32>, vector<32x128xf32>, vector<8x128xf32> -> vector<8x128xf32>
    %274 = arith.addf %272, %273 : vector<8x128xf32>
    %275 = arith.mulf %274, %80 : vector<8x128xf32>
    %276 = math.tanh %275 : vector<8x128xf32>
    %cst_102 = arith.constant 1.000000e+00 : f32
    %277 = vector.broadcast %cst_102 : f32 to vector<8x128xf32>
    %278 = arith.addf %276, %277 : vector<8x128xf32>
    %cst_103 = arith.constant 5.000000e-01 : f32
    %279 = vector.broadcast %cst_103 : f32 to vector<8x128xf32>
    %280 = arith.mulf %279, %278 : vector<8x128xf32>
    %281 = arith.select %77, %276, %280 : vector<8x128xi1>, vector<8x128xf32>
    %282 = vector.extract_strided_slice %281 {offsets = [0, 0], sizes = [8, 32], strides = [1, 1]} : vector<8x128xf32> to vector<8x32xf32>
    %283 = vector.extract_strided_slice %281 {offsets = [0, 32], sizes = [8, 32], strides = [1, 1]} : vector<8x128xf32> to vector<8x32xf32>
    %284 = vector.extract_strided_slice %281 {offsets = [0, 64], sizes = [8, 32], strides = [1, 1]} : vector<8x128xf32> to vector<8x32xf32>
    %285 = vector.extract_strided_slice %281 {offsets = [0, 96], sizes = [8, 32], strides = [1, 1]} : vector<8x128xf32> to vector<8x32xf32>
    %286 = arith.mulf %283, %250 : vector<8x32xf32>
    %287 = arith.mulf %282, %284 : vector<8x32xf32>
    %288 = arith.addf %286, %287 : vector<8x32xf32>
    %289 = math.tanh %288 : vector<8x32xf32>
    %290 = arith.mulf %285, %289 : vector<8x32xf32>
    %291 = tpu.concatenate %290, %271 in 1 : vector<8x32xf32>, vector<8x32xf32> -> vector<8x64xf32>
    %cst_104 = arith.constant dense<0.000000e+00> : vector<8x128xf32>
    %292 = tpu.matmul %291, %68, %cst_104 {dimension_numbers = #tpu.dot_dimension_numbers<[1], [0], [0], [1], [0, 0, 1, 1], [], []>} : vector<8x64xf32>, vector<64x128xf32>, vector<8x128xf32> -> vector<8x128xf32>
    %293 = arith.addf %292, %71 : vector<8x128xf32>
    %294 = arith.mulf %293, %80 : vector<8x128xf32>
    %295 = math.tanh %294 : vector<8x128xf32>
    %cst_105 = arith.constant 1.000000e+00 : f32
    %296 = vector.broadcast %cst_105 : f32 to vector<8x128xf32>
    %297 = arith.addf %295, %296 : vector<8x128xf32>
    %cst_106 = arith.constant 5.000000e-01 : f32
    %298 = vector.broadcast %cst_106 : f32 to vector<8x128xf32>
    %299 = arith.mulf %298, %297 : vector<8x128xf32>
    %300 = arith.select %77, %295, %299 : vector<8x128xi1>, vector<8x128xf32>
    %301 = vector.extract_strided_slice %300 {offsets = [0, 0], sizes = [8, 32], strides = [1, 1]} : vector<8x128xf32> to vector<8x32xf32>
    %302 = vector.extract_strided_slice %300 {offsets = [0, 32], sizes = [8, 32], strides = [1, 1]} : vector<8x128xf32> to vector<8x32xf32>
    %303 = vector.extract_strided_slice %300 {offsets = [0, 64], sizes = [8, 32], strides = [1, 1]} : vector<8x128xf32> to vector<8x32xf32>
    %304 = vector.extract_strided_slice %300 {offsets = [0, 96], sizes = [8, 32], strides = [1, 1]} : vector<8x128xf32> to vector<8x32xf32>
    %305 = arith.mulf %302, %269 : vector<8x32xf32>
    %306 = arith.mulf %301, %303 : vector<8x32xf32>
    %307 = arith.addf %305, %306 : vector<8x32xf32>
    %308 = math.tanh %307 : vector<8x32xf32>
    %309 = arith.mulf %304, %308 : vector<8x32xf32>
    %310 = vector.extract_strided_slice %66 {offsets = [48, 0], sizes = [8, 128], strides = [1, 1]} : vector<64x128xf32> to vector<8x128xf32>
    %cst_107 = arith.constant dense<0.000000e+00> : vector<8x128xf32>
    %311 = tpu.matmul %290, %67, %cst_107 {dimension_numbers = #tpu.dot_dimension_numbers<[1], [0], [0], [1], [0, 0, 1, 1], [], []>} : vector<8x32xf32>, vector<32x128xf32>, vector<8x128xf32> -> vector<8x128xf32>
    %312 = arith.addf %310, %311 : vector<8x128xf32>
    %313 = arith.mulf %312, %80 : vector<8x128xf32>
    %314 = math.tanh %313 : vector<8x128xf32>
    %cst_108 = arith.constant 1.000000e+00 : f32
    %315 = vector.broadcast %cst_108 : f32 to vector<8x128xf32>
    %316 = arith.addf %314, %315 : vector<8x128xf32>
    %cst_109 = arith.constant 5.000000e-01 : f32
    %317 = vector.broadcast %cst_109 : f32 to vector<8x128xf32>
    %318 = arith.mulf %317, %316 : vector<8x128xf32>
    %319 = arith.select %77, %314, %318 : vector<8x128xi1>, vector<8x128xf32>
    %320 = vector.extract_strided_slice %319 {offsets = [0, 0], sizes = [8, 32], strides = [1, 1]} : vector<8x128xf32> to vector<8x32xf32>
    %321 = vector.extract_strided_slice %319 {offsets = [0, 32], sizes = [8, 32], strides = [1, 1]} : vector<8x128xf32> to vector<8x32xf32>
    %322 = vector.extract_strided_slice %319 {offsets = [0, 64], sizes = [8, 32], strides = [1, 1]} : vector<8x128xf32> to vector<8x32xf32>
    %323 = vector.extract_strided_slice %319 {offsets = [0, 96], sizes = [8, 32], strides = [1, 1]} : vector<8x128xf32> to vector<8x32xf32>
    %324 = arith.mulf %321, %288 : vector<8x32xf32>
    %325 = arith.mulf %320, %322 : vector<8x32xf32>
    %326 = arith.addf %324, %325 : vector<8x32xf32>
    %327 = math.tanh %326 : vector<8x32xf32>
    %328 = arith.mulf %323, %327 : vector<8x32xf32>
    %329 = tpu.concatenate %328, %309 in 1 : vector<8x32xf32>, vector<8x32xf32> -> vector<8x64xf32>
    %cst_110 = arith.constant dense<0.000000e+00> : vector<8x128xf32>
    %330 = tpu.matmul %329, %68, %cst_110 {dimension_numbers = #tpu.dot_dimension_numbers<[1], [0], [0], [1], [0, 0, 1, 1], [], []>} : vector<8x64xf32>, vector<64x128xf32>, vector<8x128xf32> -> vector<8x128xf32>
    %331 = arith.addf %330, %71 : vector<8x128xf32>
    %332 = arith.mulf %331, %80 : vector<8x128xf32>
    %333 = math.tanh %332 : vector<8x128xf32>
    %cst_111 = arith.constant 1.000000e+00 : f32
    %334 = vector.broadcast %cst_111 : f32 to vector<8x128xf32>
    %335 = arith.addf %333, %334 : vector<8x128xf32>
    %cst_112 = arith.constant 5.000000e-01 : f32
    %336 = vector.broadcast %cst_112 : f32 to vector<8x128xf32>
    %337 = arith.mulf %336, %335 : vector<8x128xf32>
    %338 = arith.select %77, %333, %337 : vector<8x128xi1>, vector<8x128xf32>
    %339 = vector.extract_strided_slice %338 {offsets = [0, 0], sizes = [8, 32], strides = [1, 1]} : vector<8x128xf32> to vector<8x32xf32>
    %340 = vector.extract_strided_slice %338 {offsets = [0, 32], sizes = [8, 32], strides = [1, 1]} : vector<8x128xf32> to vector<8x32xf32>
    %341 = vector.extract_strided_slice %338 {offsets = [0, 64], sizes = [8, 32], strides = [1, 1]} : vector<8x128xf32> to vector<8x32xf32>
    %342 = vector.extract_strided_slice %338 {offsets = [0, 96], sizes = [8, 32], strides = [1, 1]} : vector<8x128xf32> to vector<8x32xf32>
    %343 = arith.mulf %340, %307 : vector<8x32xf32>
    %344 = arith.mulf %339, %341 : vector<8x32xf32>
    %345 = arith.addf %343, %344 : vector<8x32xf32>
    %346 = math.tanh %345 : vector<8x32xf32>
    %347 = arith.mulf %342, %346 : vector<8x32xf32>
    %348 = vector.extract_strided_slice %66 {offsets = [56, 0], sizes = [8, 128], strides = [1, 1]} : vector<64x128xf32> to vector<8x128xf32>
    %cst_113 = arith.constant dense<0.000000e+00> : vector<8x128xf32>
    %349 = tpu.matmul %328, %67, %cst_113 {dimension_numbers = #tpu.dot_dimension_numbers<[1], [0], [0], [1], [0, 0, 1, 1], [], []>} : vector<8x32xf32>, vector<32x128xf32>, vector<8x128xf32> -> vector<8x128xf32>
    %350 = arith.addf %348, %349 : vector<8x128xf32>
    %351 = arith.mulf %350, %80 : vector<8x128xf32>
    %352 = math.tanh %351 : vector<8x128xf32>
    %cst_114 = arith.constant 1.000000e+00 : f32
    %353 = vector.broadcast %cst_114 : f32 to vector<8x128xf32>
    %354 = arith.addf %352, %353 : vector<8x128xf32>
    %cst_115 = arith.constant 5.000000e-01 : f32
    %355 = vector.broadcast %cst_115 : f32 to vector<8x128xf32>
    %356 = arith.mulf %355, %354 : vector<8x128xf32>
    %357 = arith.select %77, %352, %356 : vector<8x128xi1>, vector<8x128xf32>
    %358 = vector.extract_strided_slice %357 {offsets = [0, 0], sizes = [8, 32], strides = [1, 1]} : vector<8x128xf32> to vector<8x32xf32>
    %359 = vector.extract_strided_slice %357 {offsets = [0, 32], sizes = [8, 32], strides = [1, 1]} : vector<8x128xf32> to vector<8x32xf32>
    %360 = vector.extract_strided_slice %357 {offsets = [0, 64], sizes = [8, 32], strides = [1, 1]} : vector<8x128xf32> to vector<8x32xf32>
    %361 = vector.extract_strided_slice %357 {offsets = [0, 96], sizes = [8, 32], strides = [1, 1]} : vector<8x128xf32> to vector<8x32xf32>
    %362 = arith.mulf %359, %326 : vector<8x32xf32>
    %363 = arith.mulf %358, %360 : vector<8x32xf32>
    %364 = arith.addf %362, %363 : vector<8x32xf32>
    %365 = math.tanh %364 : vector<8x32xf32>
    %366 = arith.mulf %361, %365 : vector<8x32xf32>
    %367 = tpu.concatenate %366, %347 in 1 : vector<8x32xf32>, vector<8x32xf32> -> vector<8x64xf32>
    %cst_116 = arith.constant dense<0.000000e+00> : vector<8x128xf32>
    %368 = tpu.matmul %367, %68, %cst_116 {dimension_numbers = #tpu.dot_dimension_numbers<[1], [0], [0], [1], [0, 0, 1, 1], [], []>} : vector<8x64xf32>, vector<64x128xf32>, vector<8x128xf32> -> vector<8x128xf32>
    %369 = arith.addf %368, %71 : vector<8x128xf32>
    %370 = arith.mulf %369, %80 : vector<8x128xf32>
    %371 = math.tanh %370 : vector<8x128xf32>
    %cst_117 = arith.constant 1.000000e+00 : f32
    %372 = vector.broadcast %cst_117 : f32 to vector<8x128xf32>
    %373 = arith.addf %371, %372 : vector<8x128xf32>
    %cst_118 = arith.constant 5.000000e-01 : f32
    %374 = vector.broadcast %cst_118 : f32 to vector<8x128xf32>
    %375 = arith.mulf %374, %373 : vector<8x128xf32>
    %376 = arith.select %77, %371, %375 : vector<8x128xi1>, vector<8x128xf32>
    %377 = vector.extract_strided_slice %376 {offsets = [0, 0], sizes = [8, 32], strides = [1, 1]} : vector<8x128xf32> to vector<8x32xf32>
    %378 = vector.extract_strided_slice %376 {offsets = [0, 32], sizes = [8, 32], strides = [1, 1]} : vector<8x128xf32> to vector<8x32xf32>
    %379 = vector.extract_strided_slice %376 {offsets = [0, 64], sizes = [8, 32], strides = [1, 1]} : vector<8x128xf32> to vector<8x32xf32>
    %380 = vector.extract_strided_slice %376 {offsets = [0, 96], sizes = [8, 32], strides = [1, 1]} : vector<8x128xf32> to vector<8x32xf32>
    %381 = arith.mulf %378, %345 : vector<8x32xf32>
    %382 = arith.mulf %377, %379 : vector<8x32xf32>
    %383 = arith.addf %381, %382 : vector<8x32xf32>
    %384 = math.tanh %383 : vector<8x32xf32>
    %385 = arith.mulf %380, %384 : vector<8x32xf32>
    %386 = tpu.concatenate %119, %157, %195, %233, %271, %309, %347, %385 in 0 : vector<8x32xf32>, vector<8x32xf32>, vector<8x32xf32>, vector<8x32xf32>, vector<8x32xf32>, vector<8x32xf32>, vector<8x32xf32>, vector<8x32xf32> -> vector<64x32xf32>
    %cst_119 = arith.constant dense<0.000000e+00> : vector<64xf32>
    %387 = vector.multi_reduction <add>, %386, %cst_119 [1] : vector<64x32xf32> to vector<64xf32>
    %388 = vector.shape_cast %387 : vector<64xf32> to vector<64x1xf32>
    %cst_120 = arith.constant 3.200000e+01 : f32
    %389 = vector.broadcast %cst_120 : f32 to vector<64x1xf32>
    %390 = arith.divf %388, %389 : vector<64x1xf32>
    %391 = vector.broadcast %390 : vector<64x1xf32> to vector<64x32xf32>
    %392 = arith.subf %386, %391 : vector<64x32xf32>
    %393 = arith.mulf %392, %392 : vector<64x32xf32>
    %cst_121 = arith.constant dense<0.000000e+00> : vector<64xf32>
    %394 = vector.multi_reduction <add>, %393, %cst_121 [1] : vector<64x32xf32> to vector<64xf32>
    %395 = vector.shape_cast %394 : vector<64xf32> to vector<64x1xf32>
    %cst_122 = arith.constant 3.200000e+01 : f32
    %396 = vector.broadcast %cst_122 : f32 to vector<64x1xf32>
    %397 = arith.divf %395, %396 : vector<64x1xf32>
    %398 = vector.broadcast %390 : vector<64x1xf32> to vector<64x32xf32>
    %399 = arith.subf %386, %398 : vector<64x32xf32>
    %cst_123 = arith.constant 9.99999974E-6 : f32
    %400 = vector.broadcast %cst_123 : f32 to vector<64x1xf32>
    %401 = arith.addf %397, %400 : vector<64x1xf32>
    %402 = math.rsqrt %401 : vector<64x1xf32>
    %403 = vector.broadcast %402 : vector<64x1xf32> to vector<64x32xf32>
    %404 = arith.mulf %399, %403 : vector<64x32xf32>
    %c0_124 = arith.constant 0 : index
    %c0_125 = arith.constant 0 : index
    %405 = vector.load %arg5[%c0_124, %c0_125] : memref<1x32xf32, #tpu.memory_space<vmem>>, vector<1x32xf32>
    %406 = vector.broadcast %405 : vector<1x32xf32> to vector<64x32xf32>
    %407 = arith.mulf %404, %406 : vector<64x32xf32>
    %c0_126 = arith.constant 0 : index
    %c0_127 = arith.constant 0 : index
    %408 = vector.load %arg6[%c0_126, %c0_127] : memref<1x32xf32, #tpu.memory_space<vmem>>, vector<1x32xf32>
    %409 = vector.broadcast %408 : vector<1x32xf32> to vector<64x32xf32>
    %410 = arith.addf %407, %409 : vector<64x32xf32>
    %c0_128 = arith.constant 0 : index
    %c0_129 = arith.constant 0 : index
    %411 = vector.load %arg7[%c0_128, %c0_129] : memref<32x128xf32, #tpu.memory_space<vmem>>, vector<32x128xf32>
    %cst_130 = arith.constant dense<0.000000e+00> : vector<64x128xf32>
    %412 = tpu.matmul %410, %411, %cst_130 {dimension_numbers = #tpu.dot_dimension_numbers<[1], [0], [0], [1], [0, 0, 1, 1], [], []>} : vector<64x32xf32>, vector<32x128xf32>, vector<64x128xf32> -> vector<64x128xf32>
    %c0_131 = arith.constant 0 : index
    %c0_132 = arith.constant 0 : index
    %413 = vector.load %arg8[%c0_131, %c0_132] : memref<1x128xf32, #tpu.memory_space<vmem>>, vector<1x128xf32>
    %414 = vector.broadcast %413 : vector<1x128xf32> to vector<64x128xf32>
    %415 = arith.addf %412, %414 : vector<64x128xf32>
    %c0_133 = arith.constant 0 : index
    %c0_134 = arith.constant 0 : index
    %416 = vector.load %arg9[%c0_133, %c0_134] : memref<64x128xf32, #tpu.memory_space<vmem>>, vector<64x128xf32>
    tpu.vector_store %arg9[%c0_133, %c0_134], %415 {strides = array<i32>} : memref<64x128xf32, #tpu.memory_space<vmem>>, vector<64x128xf32>,
    return
  }
}

</mosaic_0001>

<bundles_post_ra>
// kernel: password_generator_forward.1
= control target key start
LH: loop header
LB: loop body
LE: loop exit
PB: predicated region body
PF: predicated region fallthrough
CT: control target
= control target key end

     0   :  { %14 = vsyncpa [#allocation5], 0  ;;  %s3608_s0 = inlined_call_operand.hbm [shape: s32[2,8], index: 0, kind: input, shape index: {}]   ;;  %s3609_s1 = inlined_call_operand.hbm [shape: f32[64,128], index: 1, kind: input, shape index: {}]   ;;  %s3610_s2 = inlined_call_operand.hbm [shape: f32[32,128], index: 2, kind: input, shape index: {}]   ;;  %s3611_s3 = inlined_call_operand.hbm [shape: f32[64,128], index: 3, kind: input, shape index: {}]   ;;  %s3612_s4 = inlined_call_operand.vmem [shape: f32[1,128], index: 4, kind: input, shape index: {}]   ;;  %s3613_s5 = inlined_call_operand.vmem [shape: f32[1,32], index: 5, kind: input, shape index: {}]   ;;  %s3614_s6 = inlined_call_operand.vmem [shape: f32[1,32], index: 6, kind: input, shape index: {}]   ;;  %s3615_s7 = inlined_call_operand.hbm [shape: f32[32,128], index: 7, kind: input, shape index: {}]   ;;  %s3616_s8 = inlined_call_operand.vmem [shape: f32[1,128], index: 8, kind: input, shape index: {}]   ;;  %s3617_s9 = inlined_call_operand.vmem [shape: f32[64,128], index: 9, kind: output, shape index: {}]  }
   0x1   :  { %15 = vsyncpa [#allocation4], 0 }
   0x2   :  { %16 = vsyncpa [#allocation8], 0 }
   0x3   :  { %17 = vsyncpa [#allocation11], 0  ;;  %s2956_s30 = smov [#allocation7]   ;;  %s2957_s11 = smov [#allocation6]  }
   0x4   :  { %s43_s10 = sshll.u32 %s2956_s30, 4  ;;  %s31_s12 = sshll.u32 %s2957_s11, 4  ;;  %s44_s10 = int_to_ptr.vmem [resolvable:$true] %s43_s10  ;;  %s32_s12 = int_to_ptr.vmem [resolvable:$true] %s31_s12 }
   0x5   :  { %s2850_s15 = scalar_lea.hbm %s3610_s2, 512 }
   0x6   :  { %p2851_p0 = scmp.ne.s32.totalorder %s3610_s2, %s2850_s15  ;;  %p2854_p1 = scmp.lt.u32.totalorder %s2850_s15, %s3610_s2 }
   0x8   :  { %p2856_p2 = pnand %p2854_p1, %p2851_p0 }
   0xa   :  { %2859 = shalt.err (!%p2856_p2)
}
   0xb   :  { %s2860_s20 = scalar_lea.vmem %s44_s10, 512  ;;  %p2865_p4 = scmp.lt.s32.totalorder %s44_s10, %s44_s10 }
   0xc   :  { %p2861_p3 = scmp.ne.s32.totalorder %s44_s10, %s2860_s20  ;;  %p2866_p5 = scmp.lt.s32.totalorder %s2860_s20, %s2860_s20 }
   0xe   :  { %p2867_p6 = por %p2866_p5, %p2865_p4 }
  0x10   :  { %p2868_p7 = pnand %p2867_p6, %p2861_p3 }
  0x12   :  { %2871 = shalt.err (!%p2868_p7)
}
  0x13   :  { %s2958_s21 = smov 128   ;;  %s2959_s22 = smov 8  }
  0x14   :  { %49 = dma.hbm_to_vmem [thread:$0]  %s3610_s2, 512, %s44_s10, [#allocation8], %s2958_s21, %s2958_s21, %s2959_s22  }
  0x15   :  { %s2872_s27 = scalar_lea.hbm %s3608_s0, 32 }
  0x16   :  { %p2873_p8 = scmp.ne.s32.totalorder %s3608_s0, %s2872_s27  ;;  %p2876_p9 = scmp.lt.u32.totalorder %s2872_s27, %s3608_s0 }
  0x18   :  { %p2878_p10 = pnand %p2876_p9, %p2873_p8 }
  0x1a   :  { %2881 = shalt.err (!%p2878_p10)
}
  0x1b   :  { %s2960_s13 = smov [#allocation3]   ;;  %s2882_s16 = scalar_lea.hbm %s3609_s1, 1024 }
  0x1c   :  { %25 = dma.hbm_to_smem %s3608_s0, 32, %s2960_s13, [#allocation5]  }
  0x1d   :  { %p2883_p11 = scmp.ne.s32.totalorder %s3609_s1, %s2882_s16  ;;  %p2886_p12 = scmp.lt.u32.totalorder %s2882_s16, %s3609_s1 }
  0x1f   :  { %p2888_p13 = pnand %p2886_p12, %p2883_p11 }
  0x21   :  { %2891 = shalt.err (!%p2888_p13)
}
  0x22   :  { %s2892_s23 = scalar_lea.vmem %s32_s12, 1024  ;;  %p2897_p1 = scmp.lt.s32.totalorder %s32_s12, %s32_s12 }
  0x23   :  { %p2893_p0 = scmp.ne.s32.totalorder %s32_s12, %s2892_s23  ;;  %p2898_p2 = scmp.lt.s32.totalorder %s2892_s23, %s2892_s23 }
  0x25   :  { %p2899_p3 = por %p2898_p2, %p2897_p1 }
  0x27   :  { %p2900_p4 = pnand %p2899_p3, %p2893_p0 }
  0x29   :  { %2903 = shalt.err (!%p2900_p4)
}
  0x2a   :  { %37 = dma.hbm_to_vmem [thread:$0]  %s3609_s1, 1024, %s32_s12, [#allocation4], %s2958_s21, %s2958_s21, %s2959_s22  }
  0x2b   :  { %s2961_s25 = smov [#allocation9]   ;;  %s2962_s27 = smov [#allocation10]  }
  0x2c   :  { %s55_s26 = sshll.u32 %s2961_s25, 4  ;;  %s73_s28 = sshll.u32 %s2962_s27, 4  ;;  %s56_s26 = int_to_ptr.vmem [resolvable:$true] %s55_s26  ;;  %s74_s28 = int_to_ptr.vmem [resolvable:$true] %s73_s28 }
  0x2d   :  { %s2904_s11 = scalar_lea.hbm %s3611_s3, 1024 }
  0x2e   :  { %p2905_p5 = scmp.ne.s32.totalorder %s3611_s3, %s2904_s11  ;;  %p2908_p6 = scmp.lt.u32.totalorder %s2904_s11, %s3611_s3 }
  0x30   :  { %p2910_p7 = pnand %p2908_p6, %p2905_p5 }
  0x32   :  { %2913 = shalt.err (!%p2910_p7)
}
  0x33   :  { %s2914_s1 = scalar_lea.vmem %s56_s26, 1024  ;;  %p2919_p9 = scmp.lt.s32.totalorder %s56_s26, %s56_s26 }
  0x34   :  { %p2915_p8 = scmp.ne.s32.totalorder %s56_s26, %s2914_s1  ;;  %p2920_p10 = scmp.lt.s32.totalorder %s2914_s1, %s2914_s1 }
  0x36   :  { %p2921_p11 = por %p2920_p10, %p2919_p9 }
  0x38   :  { %p2922_p12 = pnand %p2921_p11, %p2915_p8 }
  0x3a   :  { %2925 = shalt.err (!%p2922_p12)
}
  0x3b   :  { %61 = dma.hbm_to_vmem [thread:$0]  %s3611_s3, 1024, %s56_s26, [#allocation8], %s2958_s21, %s2958_s21, %s2959_s22  }
  0x3c   :  { %s2926_s18 = scalar_lea.hbm %s3615_s7, 512 }
  0x3d   :  { %p2927_p13 = scmp.ne.s32.totalorder %s3615_s7, %s2926_s18  ;;  %p2930_p0 = scmp.lt.u32.totalorder %s2926_s18, %s3615_s7 }
  0x3f   :  { %p2932_p1 = pnand %p2930_p0, %p2927_p13 }
  0x41   :  { %2935 = shalt.err (!%p2932_p1)
}
  0x42   :  { %s2936_s24 = scalar_lea.vmem %s74_s28, 512  ;;  %p2941_p3 = scmp.lt.s32.totalorder %s74_s28, %s74_s28 }
  0x43   :  { %p2937_p2 = scmp.ne.s32.totalorder %s74_s28, %s2936_s24  ;;  %p2942_p4 = scmp.lt.s32.totalorder %s2936_s24, %s2936_s24 }
  0x45   :  { %p2943_p5 = por %p2942_p4, %p2941_p3 }
  0x47   :  { %p2944_p6 = pnand %p2943_p5, %p2937_p2 }
  0x49   :  { %2947 = shalt.err (!%p2944_p6)
}
  0x4a   :  { %79 = dma.hbm_to_vmem [thread:$0]  %s3615_s7, 512, %s74_s28, [#allocation11], %s2958_s21, %s2958_s21, %s2959_s22  }
  0x4b   :  { %2948 = dma.done.wait [#allocation5], 32  }
  0x4c   :  { %2949 = vsyncadd [#allocation5], 4294967264 }
  0x4d   :  { %2950 = dma.done.wait [#allocation4], 1024  }
  0x4e   :  { %2951 = vsyncadd [#allocation4], 4294966272 }
  0x4f   :  { %2952 = dma.done.wait [#allocation8], 1536  }
  0x50   :  { %2953 = vsyncadd [#allocation8], 4294965760 }
  0x51   :  { %2954 = dma.done.wait [#allocation11], 512  }
  0x52   :  { %2955 = vsyncadd [#allocation11], 4294966784 }
  0x53   :  { %97 = sfence }
  0x54   :  { %v178_v0 = vld [vmem:[#allocation7] sm:$0xff]  ;;  %v179_v1 = vld [vmem:[#allocation7 + $0x8] sm:$0xff]  ;;  %v180_v2 = vld [vmem:[#allocation7 + $0x10] sm:$0xff]  ;;  %v2963_v3 = vmov 0.0|0.0   ;;  %vm2964_vm0 = vmmov 0   ;;  %v2965_v6 = vmov 0.0   ;;  %v197_v10 = vlaneseq }
  0x55   :  { %2604 = vmatprep.subr.bf16.mxu0 %v2963_v3  ;;  %v3093_v4 = vpack.c.bf16 %v179_v1, %v178_v0  ;;  %v181_v5 = vld [vmem:[#allocation7 + $0x18] sm:$0xff]  ;;  %2352 = vmatprep.mubr.msk.f32.mxu0 %vm2964_vm0, %v2965_v6  ;;  %98 = vst [vmem:[#allocation2] sm:$0xff] %v2965_v6  ;;  %99 = vst [vmem:[#allocation2 + $0x8] sm:$0xff] %v2965_v6  ;;  %s106_s7 = sld [smem:[#allocation3]]  ;;  %v2966_v14 = vmov 0.5   ;;  %s2967_s27 = smov 64  }
  0x56   :  { %100 = vst [vmem:[#allocation2 + $0x10] sm:$0xff] %v2965_v6  ;;  %101 = vst [vmem:[#allocation2 + $0x18] sm:$0xff] %v2965_v6  ;;  %s2178_s21 = sld [smem:[#allocation3 + $0x80]]  ;;  %2610 = vmatprep.subr.bf16.mxu1 %v2963_v3  ;;  %2371 = vmatprep.mubr.msk.f32.mxu1 %vm2964_vm0, %v2965_v6  ;;  %v3109_v7 = vpack.c.bf16 %v181_v5, %v180_v2  ;;  %v198_v11 = vand.u32 127, %v197_v10  ;;  %s2968_s28 = smov 32   ;;  %v182_v29 = vld [vmem:[#allocation9] sm:$0xff] }
  0x57   :  { %102 = vst [vmem:[#allocation2 + $0x20] sm:$0xff] %v2965_v6  ;;  %103 = vst [vmem:[#allocation2 + $0x28] sm:$0xff] %v2965_v6  ;;  %2606 = vmatpush3.bf16.msra.mxu0 %v3093_v4  ;;  %v183_v30 = vld [vmem:[#allocation9 + $0x8] sm:$0xff]  ;;  %v184_v31 = vld [vmem:[#allocation9 + $0x10] sm:$0xff]  ;;  %s2179_s29 = sld [smem:[#allocation3 + $0x1]]  ;;  %vm203_vm4 = vcmask 261120  }
  0x58   :  { %104 = vst [vmem:[#allocation2 + $0x30] sm:$0xff] %v2965_v6  ;;  %105 = vst [vmem:[#allocation2 + $0x38] sm:$0xff] %v2965_v6  ;;  %2607 = vmatprep.subr.bf16.mxu0 %v2963_v3  ;;  %vm199_vm1 = vcmp.ge.s32.totalorder %v198_v11, 64  ;;  %vm200_vm2 = vcmp.lt.s32.totalorder %v198_v11, 96  ;;  %v3137_v32 = vpack.c.bf16 %v183_v30, %v182_v29  ;;  %v185_v33 = vld [vmem:[#allocation9 + $0x18] sm:$0xff]  ;;  %v186_v35 = vld [vmem:[#allocation9 + $0x20] sm:$0xff] }
  0x59   :  { %vm3121_vm3 = vmand %vm199_vm1, %vm200_vm2  ;;  %v3140_v34 = vpack.c.bf16 %v185_v33, %v184_v31  ;;  %v187_v36 = vld [vmem:[#allocation9 + $0x28] sm:$0xff]  ;;  %v188_v38 = vld [vmem:[#allocation9 + $0x30] sm:$0xff]  ;;  %s2180_s30 = sld [smem:[#allocation3 + $0x81]]  ;;  %vm305_vm5 = vcmask 523264   ;;  %s2182_s2 = sld [smem:[#allocation3 + $0x82]] }
  0x5a   :  { %v3127_v15 = vsel %vm3121_vm3, 1.0, %v2966_v14  ;;  %2612 = vmatpush3.bf16.msra.mxu1 %v3137_v32  ;;  %v3144_v37 = vpack.c.bf16 %v187_v36, %v186_v35  ;;  %v189_v39 = vld [vmem:[#allocation9 + $0x38] sm:$0xff]  ;;  %v3177_v49 = vld [vmem:[%s3612_s4] ss:$0 sm:$0xff]  ;;  %s2181_s4 = sld [smem:[#allocation3 + $0x2]]  ;;  %s2183_s10 = sld [smem:[#allocation3 + $0x3]] }
  0x5b   :  { %2609 = vmatpush3.bf16.msra.mxu0 %v3109_v7  ;;  %s107_s22 = scalar_lea.vmem [#allocation6], %s106_s7  ;;  %2613 = vmatprep.subr.bf16.mxu1 %v2963_v3  ;;  %v3149_v41 = vpack.c.bf16 %v189_v39, %v188_v38  ;;  %s2184_s16 = sld [smem:[#allocation3 + $0x83]] }
  0x5c   :  { %v108_v8 = vld [vmem:[%s107_s22] sm:$0x1]  ;;  %s111_s26 = scalar_lea.vmem [#allocation6], %s2178_s21  ;;  %2622 = vmatprep.subr.bf16.mxu0 %v2963_v3  ;;  %s2185_s19 = sld [smem:[#allocation3 + $0x4]] }
  0x5d   :  { %v112_v9 = vld [vmem:[%s111_s26] sm:$0x1]  ;;  %109 = vst [vmem:[#allocation2] sm:$0x1] %v108_v8  ;;  %s115_s11 = scalar_lea.vmem [#allocation6], %s2179_s29  ;;  %s2186_s20 = sld [smem:[#allocation3 + $0x84]] }
  0x5e   :  { %113 = vst [vmem:[#allocation2 + $0x1] sm:$0x1] %v112_v9  ;;  %2353 = vmatmul.mubr.f32.vlgmr.msra.gmra.mrb[0].mxu0 %v2965_v6  ;;  %2615 = vmatpush3.bf16.msra.mxu1 %v3140_v34  ;;  %v116_v42 = vld [vmem:[%s115_s11] sm:$0x1]  ;;  %s2187_s24 = sld [smem:[#allocation3 + $0x5]]  ;;  %s2189_s21 = sld [smem:[#allocation3 + $0x6]] }
  0x5f   :  { %2624 = vmatpush3.bf16.msra.mxu0 %v3093_v4  ;;  %2382 = vmatprep.mubr.msk.f32.mxu0 %vm2964_vm0, %v2965_v6  ;;  %s119_s13 = scalar_lea.vmem [#allocation6], %s2180_s30  ;;  %117 = vst [vmem:[#allocation2 + $0x8] sm:$0x1] %v116_v42  ;;  %s127_s12 = scalar_lea.vmem [#allocation6], %s2182_s2 }
  0x60   :  { %2625 = vmatprep.subr.bf16.mxu0 %v2963_v3  ;;  %2616 = vmatprep.subr.bf16.mxu1 %v2963_v3  ;;  %v120_v43 = vld [vmem:[%s119_s13] sm:$0x1]  ;;  %s123_s1 = scalar_lea.vmem [#allocation6], %s2181_s4  ;;  %s131_s17 = scalar_lea.vmem [#allocation6], %s2183_s10 }
  0x61   :  { %121 = vst [vmem:[#allocation2 + $0x9] sm:$0x1] %v120_v43  ;;  %s135_s18 = scalar_lea.vmem [#allocation6], %s2184_s16  ;;  %s2188_s3 = sld [smem:[#allocation3 + $0x85]] }
  0x62   :  { %2618 = vmatpush3.bf16.msra.mxu1 %v3144_v37  ;;  %s139_s23 = scalar_lea.vmem [#allocation6], %s2185_s19  ;;  %s2190_s22 = sld [smem:[#allocation3 + $0x86]] }
  0x63   :  { %2627 = vmatpush3.bf16.msra.mxu0 %v3109_v7  ;;  %2619 = vmatprep.subr.bf16.mxu1 %v2963_v3  ;;  %s143_s0 = scalar_lea.vmem [#allocation6], %s2186_s20  ;;  %s2191_s30 = sld [smem:[#allocation3 + $0x7]] }
  0x64   :  { %2628 = vmatprep.subr.bf16.mxu0 %v2963_v3  ;;  %s147_s25 = scalar_lea.vmem [#allocation6], %s2187_s24  ;;  %s155_s26 = scalar_lea.vmem [#allocation6], %s2189_s21 }
  0x65   :  { %v170_v13 = vld [vmem:[#allocation2] sm:$0xff]  ;;  %s2192_s11 = sld [smem:[#allocation3 + $0x87]]  ;;  %s2969_s4 = smov 96  }
  0x66   :  { %2621 = vmatpush3.bf16.msra.mxu1 %v3149_v41 }
  0x67   :  { %2640 = vmatprep.subr.bf16.mxu1 %v2963_v3  ;;  %s151_s7 = scalar_lea.vmem [#allocation6], %s2188_s3 }
  0x68   :  { %v171_v48 = vld [vmem:[#allocation2 + $0x8] sm:$0xff]  ;;  %s159_s29 = scalar_lea.vmem [#allocation6], %s2190_s22 }
  0x69   :  { %s163_s13 = scalar_lea.vmem [#allocation6], %s2191_s30 }
  0x6b   :  { %s167_s14 = scalar_lea.vmem [#allocation6], %s2192_s11 }
 0x131   :  { %v273_v16 = vpop.f32.mrb[0].mxu0 }
 0x132   :  { %v277_v17 = vadd.f32 %v273_v16, %v170_v13  ;;  %v2354_v18 = vpop.f32.mrb[1].mxu0 }
 0x134   :  { %v278_v19 = vmul.f32 %v277_v17, %v3127_v15 }
 0x136   :  { %2770 = vtanh.f32 %v278_v19 }
 0x140   :  { %v2771_v20 = vpop.eup %2770 }
 0x141   :  { %v280_v21 = vadd.f32 1.0, %v2771_v20 }
 0x143   :  { %v281_v22 = vmul.f32 0.5, %v280_v21  ;;  %v128_v21 = vld [vmem:[%s127_s12] sm:$0x1] }
 0x144   :  { %129 = vst [vmem:[#allocation2 + $0x11] sm:$0x1] %v128_v21 }
 0x145   :  { %v282_v23 = vsel %vm3121_vm3, %v2771_v20, %v281_v22  ;;  %v124_v20 = vld [vmem:[%s123_s1] sm:$0x1] }
 0x146   :  { %285 = vrot.lane.b32.xlu0 %v282_v23, %s2967_s27  ;;  %v283_v26 = vmul.f32 0.0, %v282_v23  ;;  %125 = vst [vmem:[#allocation2 + $0x10] sm:$0x1] %v124_v20 }
 0x14d   :  { %v172_v29 = vld [vmem:[#allocation2 + $0x10] sm:$0xff] }
 0x1b8   :  { %v286_v24 = vpop.permute.xlu0 %285 }
 0x1b9   :  { %v288_v25 = vmul.f32 %v286_v24, %v282_v23 }
 0x1bb   :  { %290 = vrot.lane.b32.xlu0 %v288_v25, %s2968_s28 }
 0x22d   :  { %v291_v27 = vpop.permute.xlu0 %290 }
 0x22e   :  { %v3134_v28 = vadd.f32 %v291_v27, %v283_v26 }
 0x230   :  { %2772 = vtanh.f32 %v3134_v28 }
 0x23a   :  { %v2773_v40 = vpop.eup %2772 }
 0x23b   :  { %296 = vrot.lane.b32.xlu1 %v2773_v40, %s2967_s27 }
 0x2ad   :  { %v297_v44 = vpop.permute.xlu1 %296 }
 0x2ae   :  { %v299_v45 = vmul.f32 %v297_v44, %v282_v23 }
 0x2b0   :  { %301 = vrot.lane.b32.xlu1 %v299_v45, %s2968_s28 }
 0x322   :  { %v302_v46 = vpop.permute.xlu1 %301 }
 0x323   :  { %2383 = vmatmul.mubr.msk.f32.vlgmr.msra.gmra.mrb[2].mxu0 %vm203_vm4, %v302_v46  ;;  %v304_v47 = vsel %vm203_vm4, %v302_v46, 0.0 }
 0x324   :  { %2372 = vmatmul.mubr.msk.f32.vlgmr.msra.gmra.mrb[0].mxu1 %vm305_vm5, %v304_v47  ;;  %2630 = vmatpush3.bf16.msra.mxu0 %v3137_v32 }
 0x325   :  { %2631 = vmatprep.subr.bf16.mxu0 %v2963_v3  ;;  %2642 = vmatpush3.bf16.msra.mxu1 %v3093_v4 }
 0x326   :  { %2643 = vmatprep.subr.bf16.mxu1 %v2963_v3  ;;  %2412 = vmatprep.mubr.msk.f32.mxu1 %vm2964_vm0, %v2965_v6 }
 0x327   :  { %2401 = vmatprep.mubr.msk.f32.mxu0 %vm2964_vm0, %v2965_v6 }
 0x328   :  { %2633 = vmatpush3.bf16.msra.mxu0 %v3140_v34 }
 0x329   :  { %2634 = vmatprep.subr.bf16.mxu0 %v2963_v3  ;;  %2645 = vmatpush3.bf16.msra.mxu1 %v3109_v7 }
 0x32a   :  { %2646 = vmatprep.subr.bf16.mxu1 %v2963_v3 }
 0x32c   :  { %2636 = vmatpush3.bf16.msra.mxu0 %v3144_v37 }
 0x32d   :  { %2637 = vmatprep.subr.bf16.mxu0 %v2963_v3 }
 0x330   :  { %2639 = vmatpush3.bf16.msra.mxu0 %v3149_v41 }
 0x331   :  { %2658 = vmatprep.subr.bf16.mxu0 %v2963_v3 }
 0x3f6   :  { %v469_v50 = vpop.f32.mrb[2].mxu0 }
 0x3f7   :  { %v473_v51 = vadd.f32 %v469_v50, %v171_v48  ;;  %v375_v52 = vpop.f32.mrb[0].mxu1  ;;  %v2384_v53 = vpop.f32.mrb[3].mxu0 }
 0x3f8   :  { %v376_v54 = vadd.f32 %v3177_v49, %v375_v52  ;;  %v2373_v55 = vpop.f32.mrb[1].mxu1 }
 0x3f9   :  { %v474_v56 = vmul.f32 %v473_v51, %v3127_v15 }
 0x3fa   :  { %v379_v57 = vmul.f32 %v376_v54, %v3127_v15 }
 0x3fb   :  { %2774 = vtanh.f32 %v474_v56 }
 0x3fc   :  { %2776 = vtanh.f32 %v379_v57 }
 0x405   :  { %v2775_v58 = vpop.eup %2774 }
 0x406   :  { %v2777_v59 = vpop.eup %2776  ;;  %v476_v60 = vadd.f32 1.0, %v2775_v58 }
 0x407   :  { %v381_v61 = vadd.f32 1.0, %v2777_v59 }
 0x408   :  { %v477_v62 = vmul.f32 0.5, %v476_v60 }
 0x409   :  { %v382_v63 = vmul.f32 0.5, %v381_v61 }
 0x40a   :  { %v478_v0 = vsel %vm3121_vm3, %v2775_v58, %v477_v62 }
 0x40b   :  { %481 = vrot.lane.b32.xlu1 %v478_v0, %s2967_s27  ;;  %v383_v1 = vsel %vm3121_vm3, %v2777_v59, %v382_v63  ;;  %v479_v10 = vmul.f32 %v478_v0, %v3134_v28 }
 0x40c   :  { %386 = vrot.lane.b32.xlu0 %v383_v1, %s2967_s27  ;;  %v384_v13 = vmul.f32 0.0, %v383_v1 }
 0x47d   :  { %v482_v2 = vpop.permute.xlu1 %481 }
 0x47e   :  { %v484_v5 = vmul.f32 %v482_v2, %v478_v0  ;;  %v387_v8 = vpop.permute.xlu0 %386 }
 0x47f   :  { %v389_v9 = vmul.f32 %v387_v8, %v383_v1 }
 0x480   :  { %486 = vrot.lane.b32.xlu1 %v484_v5, %s2968_s28 }
 0x481   :  { %391 = vrot.lane.b32.xlu0 %v389_v9, %s2968_s28 }
 0x4f2   :  { %v487_v11 = vpop.permute.xlu1 %486 }
 0x4f3   :  { %v3191_v14 = vadd.f32 %v487_v11, %v479_v10  ;;  %v392_v16 = vpop.permute.xlu0 %391 }
 0x4f4   :  { %v3193_v17 = vadd.f32 %v392_v16, %v384_v13 }
 0x4f5   :  { %2778 = vtanh.f32 %v3191_v14 }
 0x4f6   :  { %2780 = vtanh.f32 %v3193_v17 }
 0x4ff   :  { %v2779_v18 = vpop.eup %2778 }
 0x500   :  { %v2781_v19 = vpop.eup %2780  ;;  %492 = vrot.lane.b32.xlu1 %v2779_v18, %s2967_s27 }
 0x501   :  { %397 = vrot.lane.b32.xlu0 %v2781_v19, %s2967_s27 }
 0x572   :  { %v493_v22 = vpop.permute.xlu1 %492 }
 0x573   :  { %v495_v23 = vmul.f32 %v493_v22, %v478_v0  ;;  %v398_v24 = vpop.permute.xlu0 %397  ;;  %v132_v0 = vld [vmem:[%s131_s17] sm:$0x1] }
 0x574   :  { %v3199_v25 = vmul.f32 %v398_v24, %v383_v1  ;;  %v136_v1 = vld [vmem:[%s135_s18] sm:$0x1]  ;;  %133 = vst [vmem:[#allocation2 + $0x18] sm:$0x1] %v132_v0 }
 0x575   :  { %497 = vrot.lane.b32.xlu0 %v495_v23, %s2968_s28  ;;  %137 = vst [vmem:[#allocation2 + $0x19] sm:$0x1] %v136_v1 }
 0x576   :  { %501 = vrot.lane.b32.xlu1 %v3199_v25, %s2967_s27 }
 0x57c   :  { %v173_v13 = vld [vmem:[#allocation2 + $0x18] sm:$0xff] }
 0x5e7   :  { %v498_v26 = vpop.permute.xlu0 %497 }
 0x5e8   :  { %v502_v27 = vpop.permute.xlu1 %501  ;;  %2413 = vmatmul.mubr.msk.f32.vlgmr.msra.gmra.mrb[2].mxu1 %vm203_vm4, %v498_v26 }
 0x5e9   :  { %v504_v28 = vsel %vm203_vm4, %v498_v26, %v502_v27  ;;  %2648 = vmatpush3.bf16.msra.mxu1 %v3137_v32  ;;  %2431 = vmatprep.mubr.msk.f32.mxu1 %vm2964_vm0, %v2965_v6 }
 0x5ea   :  { %2402 = vmatmul.mubr.msk.f32.vlgmr.msra.gmra.mrb[4].mxu0 %vm305_vm5, %v504_v28  ;;  %2649 = vmatprep.subr.bf16.mxu1 %v2963_v3 }
 0x5eb   :  { %2660 = vmatpush3.bf16.msra.mxu0 %v3093_v4  ;;  %2442 = vmatprep.mubr.msk.f32.mxu0 %vm2964_vm0, %v2965_v6 }
 0x5ec   :  { %2661 = vmatprep.subr.bf16.mxu0 %v2963_v3 }
 0x5ed   :  { %2651 = vmatpush3.bf16.msra.mxu1 %v3140_v34 }
 0x5ee   :  { %2652 = vmatprep.subr.bf16.mxu1 %v2963_v3 }
 0x5ef   :  { %2663 = vmatpush3.bf16.msra.mxu0 %v3109_v7 }
 0x5f0   :  { %2664 = vmatprep.subr.bf16.mxu0 %v2963_v3 }
 0x5f1   :  { %2654 = vmatpush3.bf16.msra.mxu1 %v3144_v37 }
 0x5f2   :  { %2655 = vmatprep.subr.bf16.mxu1 %v2963_v3 }
 0x5f5   :  { %2657 = vmatpush3.bf16.msra.mxu1 %v3149_v41 }
 0x5f6   :  { %2676 = vmatprep.subr.bf16.mxu1 %v2963_v3 }
 0x6bb   :  { %v668_v30 = vpop.f32.mrb[2].mxu1 }
 0x6bc   :  { %v672_v31 = vadd.f32 %v668_v30, %v172_v29  ;;  %v2414_v33 = vpop.f32.mrb[3].mxu1 }
 0x6bd   :  { %v574_v35 = vpop.f32.mrb[4].mxu0 }
 0x6be   :  { %v673_v36 = vmul.f32 %v672_v31, %v3127_v15  ;;  %v575_v38 = vadd.f32 %v3177_v49, %v574_v35  ;;  %v2403_v39 = vpop.f32.mrb[5].mxu0 }
 0x6c0   :  { %2782 = vtanh.f32 %v673_v36  ;;  %v578_v40 = vmul.f32 %v575_v38, %v3127_v15 }
 0x6c2   :  { %2784 = vtanh.f32 %v578_v40 }
 0x6ca   :  { %v2783_v42 = vpop.eup %2782 }
 0x6cb   :  { %v675_v43 = vadd.f32 1.0, %v2783_v42 }
 0x6cc   :  { %v2785_v44 = vpop.eup %2784 }
 0x6cd   :  { %v676_v45 = vmul.f32 0.5, %v675_v43  ;;  %v580_v46 = vadd.f32 1.0, %v2785_v44 }
 0x6cf   :  { %v677_v47 = vsel %vm3121_vm3, %v2783_v42, %v676_v45  ;;  %v581_v48 = vmul.f32 0.5, %v580_v46 }
 0x6d0   :  { %680 = vrot.lane.b32.xlu1 %v677_v47, %s2967_s27  ;;  %v678_v55 = vmul.f32 %v677_v47, %v3191_v14 }
 0x6d1   :  { %v582_v50 = vsel %vm3121_vm3, %v2785_v44, %v581_v48 }
 0x6d2   :  { %585 = vrot.lane.b32.xlu0 %v582_v50, %s2967_s27  ;;  %v583_v58 = vmul.f32 %v582_v50, %v3193_v17 }
 0x742   :  { %v681_v51 = vpop.permute.xlu1 %680 }
 0x743   :  { %v683_v52 = vmul.f32 %v681_v51, %v677_v47  ;;  %v140_v51 = vld [vmem:[%s139_s23] sm:$0x1] }
 0x744   :  { %v586_v53 = vpop.permute.xlu0 %585  ;;  %141 = vst [vmem:[#allocation2 + $0x20] sm:$0x1] %v140_v51 }
 0x745   :  { %v588_v54 = vmul.f32 %v586_v53, %v582_v50  ;;  %685 = vrot.lane.b32.xlu1 %v683_v52, %s2968_s28  ;;  %v144_v52 = vld [vmem:[%s143_s0] sm:$0x1] }
 0x746   :  { %145 = vst [vmem:[#allocation2 + $0x21] sm:$0x1] %v144_v52 }
 0x747   :  { %590 = vrot.lane.b32.xlu0 %v588_v54, %s2968_s28 }
 0x7b7   :  { %v686_v56 = vpop.permute.xlu1 %685 }
 0x7b8   :  { %v3235_v57 = vadd.f32 %v686_v56, %v678_v55 }
 0x7b9   :  { %v591_v59 = vpop.permute.xlu0 %590 }
 0x7ba   :  { %2786 = vtanh.f32 %v3235_v57  ;;  %v3239_v60 = vadd.f32 %v591_v59, %v583_v58  ;;  %v174_v58 = vld [vmem:[#allocation2 + $0x20] sm:$0xff] }
 0x7bc   :  { %2788 = vtanh.f32 %v3239_v60 }
 0x7c4   :  { %v2787_v61 = vpop.eup %2786 }
 0x7c5   :  { %691 = vrot.lane.b32.xlu1 %v2787_v61, %s2967_s27 }
 0x7c6   :  { %v2789_v62 = vpop.eup %2788 }
 0x7c7   :  { %596 = vrot.lane.b32.xlu0 %v2789_v62, %s2967_s27 }
 0x837   :  { %v692_v63 = vpop.permute.xlu1 %691 }
 0x838   :  { %v694_v2 = vmul.f32 %v692_v63, %v677_v47 }
 0x839   :  { %v597_v5 = vpop.permute.xlu0 %596 }
 0x83a   :  { %v3244_v8 = vmul.f32 %v597_v5, %v582_v50  ;;  %696 = vrot.lane.b32.xlu0 %v694_v2, %s2968_s28 }
 0x83c   :  { %700 = vrot.lane.b32.xlu1 %v3244_v8, %s2967_s27 }
 0x8ac   :  { %v697_v9 = vpop.permute.xlu0 %696 }
 0x8ad   :  { %2443 = vmatmul.mubr.msk.f32.vlgmr.msra.gmra.mrb[6].mxu0 %vm203_vm4, %v697_v9 }
 0x8ae   :  { %v701_v10 = vpop.permute.xlu1 %700  ;;  %2666 = vmatpush3.bf16.msra.mxu0 %v3137_v32  ;;  %2461 = vmatprep.mubr.msk.f32.mxu0 %vm2964_vm0, %v2965_v6 }
 0x8af   :  { %v703_v11 = vsel %vm203_vm4, %v697_v9, %v701_v10  ;;  %2667 = vmatprep.subr.bf16.mxu0 %v2963_v3 }
 0x8b0   :  { %2432 = vmatmul.mubr.msk.f32.vlgmr.msra.gmra.mrb[4].mxu1 %vm305_vm5, %v703_v11 }
 0x8b1   :  { %2678 = vmatpush3.bf16.msra.mxu1 %v3093_v4  ;;  %2472 = vmatprep.mubr.msk.f32.mxu1 %vm2964_vm0, %v2965_v6 }
 0x8b2   :  { %2669 = vmatpush3.bf16.msra.mxu0 %v3140_v34  ;;  %2679 = vmatprep.subr.bf16.mxu1 %v2963_v3 }
 0x8b3   :  { %2670 = vmatprep.subr.bf16.mxu0 %v2963_v3 }
 0x8b5   :  { %2681 = vmatpush3.bf16.msra.mxu1 %v3109_v7 }
 0x8b6   :  { %2672 = vmatpush3.bf16.msra.mxu0 %v3144_v37  ;;  %2682 = vmatprep.subr.bf16.mxu1 %v2963_v3 }
 0x8b7   :  { %2673 = vmatprep.subr.bf16.mxu0 %v2963_v3 }
 0x8ba   :  { %2675 = vmatpush3.bf16.msra.mxu0 %v3149_v41 }
 0x8bb   :  { %2694 = vmatprep.subr.bf16.mxu0 %v2963_v3 }
 0x980   :  { %v867_v14 = vpop.f32.mrb[6].mxu0 }
 0x981   :  { %v871_v16 = vadd.f32 %v867_v14, %v173_v13  ;;  %v2444_v17 = vpop.f32.mrb[7].mxu0 }
 0x983   :  { %v872_v18 = vmul.f32 %v871_v16, %v3127_v15  ;;  %v773_v19 = vpop.f32.mrb[4].mxu1 }
 0x984   :  { %v774_v20 = vadd.f32 %v3177_v49, %v773_v19  ;;  %v2433_v21 = vpop.f32.mrb[5].mxu1 }
 0x985   :  { %2790 = vtanh.f32 %v872_v18 }
 0x986   :  { %v777_v22 = vmul.f32 %v774_v20, %v3127_v15 }
 0x988   :  { %2792 = vtanh.f32 %v777_v22 }
 0x98f   :  { %v2791_v23 = vpop.eup %2790 }
 0x990   :  { %v874_v24 = vadd.f32 1.0, %v2791_v23 }
 0x992   :  { %v2793_v26 = vpop.eup %2792  ;;  %v875_v27 = vmul.f32 0.5, %v874_v24 }
 0x993   :  { %v779_v28 = vadd.f32 1.0, %v2793_v26 }
 0x994   :  { %v876_v29 = vsel %vm3121_vm3, %v2791_v23, %v875_v27 }
 0x995   :  { %879 = vrot.lane.b32.xlu1 %v876_v29, %s2967_s27  ;;  %v780_v30 = vmul.f32 0.5, %v779_v28  ;;  %v877_v39 = vmul.f32 %v876_v29, %v3235_v57 }
 0x997   :  { %v781_v31 = vsel %vm3121_vm3, %v2793_v26, %v780_v30 }
 0x998   :  { %784 = vrot.lane.b32.xlu0 %v781_v31, %s2967_s27  ;;  %v782_v43 = vmul.f32 %v781_v31, %v3239_v60 }
 0xa07   :  { %v880_v33 = vpop.permute.xlu1 %879 }
 0xa08   :  { %v882_v35 = vmul.f32 %v880_v33, %v876_v29 }
 0xa0a   :  { %884 = vrot.lane.b32.xlu1 %v882_v35, %s2968_s28  ;;  %v785_v36 = vpop.permute.xlu0 %784  ;;  %v148_v35 = vld [vmem:[%s147_s25] sm:$0x1] }
 0xa0b   :  { %v787_v38 = vmul.f32 %v785_v36, %v781_v31  ;;  %v152_v36 = vld [vmem:[%s151_s7] sm:$0x1]  ;;  %149 = vst [vmem:[#allocation2 + $0x28] sm:$0x1] %v148_v35 }
 0xa0c   :  { %153 = vst [vmem:[#allocation2 + $0x29] sm:$0x1] %v152_v36 }
 0xa0d   :  { %789 = vrot.lane.b32.xlu0 %v787_v38, %s2968_s28 }
 0xa7c   :  { %v885_v40 = vpop.permute.xlu1 %884 }
 0xa7d   :  { %v3280_v42 = vadd.f32 %v885_v40, %v877_v39 }
 0xa7f   :  { %2794 = vtanh.f32 %v3280_v42  ;;  %v790_v44 = vpop.permute.xlu0 %789 }
 0xa80   :  { %v3284_v45 = vadd.f32 %v790_v44, %v782_v43  ;;  %v175_v44 = vld [vmem:[#allocation2 + $0x28] sm:$0xff] }
 0xa82   :  { %2796 = vtanh.f32 %v3284_v45 }
 0xa89   :  { %v2795_v46 = vpop.eup %2794 }
 0xa8a   :  { %890 = vrot.lane.b32.xlu1 %v2795_v46, %s2967_s27 }
 0xa8c   :  { %v2797_v47 = vpop.eup %2796 }
 0xa8d   :  { %795 = vrot.lane.b32.xlu0 %v2797_v47, %s2967_s27 }
 0xafc   :  { %v891_v48 = vpop.permute.xlu1 %890 }
 0xafd   :  { %v893_v50 = vmul.f32 %v891_v48, %v876_v29 }
 0xaff   :  { %895 = vrot.lane.b32.xlu0 %v893_v50, %s2968_s28  ;;  %v796_v53 = vpop.permute.xlu0 %795 }
 0xb00   :  { %v3290_v54 = vmul.f32 %v796_v53, %v781_v31 }
 0xb02   :  { %899 = vrot.lane.b32.xlu1 %v3290_v54, %s2967_s27 }
 0xb71   :  { %v896_v55 = vpop.permute.xlu0 %895 }
 0xb72   :  { %2473 = vmatmul.mubr.msk.f32.vlgmr.msra.gmra.mrb[6].mxu1 %vm203_vm4, %v896_v55 }
 0xb73   :  { %2684 = vmatpush3.bf16.msra.mxu1 %v3137_v32  ;;  %2491 = vmatprep.mubr.msk.f32.mxu1 %vm2964_vm0, %v2965_v6 }
 0xb74   :  { %v900_v56 = vpop.permute.xlu1 %899  ;;  %2685 = vmatprep.subr.bf16.mxu1 %v2963_v3 }
 0xb75   :  { %v902_v57 = vsel %vm203_vm4, %v896_v55, %v900_v56 }
 0xb76   :  { %2462 = vmatmul.mubr.msk.f32.vlgmr.msra.gmra.mrb[8].mxu0 %vm305_vm5, %v902_v57 }
 0xb77   :  { %2696 = vmatpush3.bf16.msra.mxu0 %v3093_v4  ;;  %2687 = vmatpush3.bf16.msra.mxu1 %v3140_v34 }
 0xb78   :  { %2697 = vmatprep.subr.bf16.mxu0 %v2963_v3  ;;  %2688 = vmatprep.subr.bf16.mxu1 %v2963_v3 }
 0xb79   :  { %2502 = vmatprep.mubr.msk.f32.mxu0 %vm2964_vm0, %v2965_v6 }
 0xb7b   :  { %2699 = vmatpush3.bf16.msra.mxu0 %v3109_v7  ;;  %2690 = vmatpush3.bf16.msra.mxu1 %v3144_v37 }
 0xb7c   :  { %2691 = vmatprep.subr.bf16.mxu1 %v2963_v3  ;;  %2700 = vmatprep.subr.bf16.mxu0 %v2963_v3 }
 0xb7f   :  { %2693 = vmatpush3.bf16.msra.mxu1 %v3149_v41 }
 0xb80   :  { %2712 = vmatprep.subr.bf16.mxu1 %v2963_v3 }
 0xc45   :  { %v1066_v59 = vpop.f32.mrb[6].mxu1 }
 0xc46   :  { %v1070_v60 = vadd.f32 %v1066_v59, %v174_v58  ;;  %v2474_v61 = vpop.f32.mrb[7].mxu1 }
 0xc48   :  { %v1071_v62 = vmul.f32 %v1070_v60, %v3127_v15 }
 0xc49   :  { %v972_v63 = vpop.f32.mrb[8].mxu0 }
 0xc4a   :  { %2798 = vtanh.f32 %v1071_v62  ;;  %v973_v0 = vadd.f32 %v3177_v49, %v972_v63  ;;  %v2463_v1 = vpop.f32.mrb[9].mxu0 }
 0xc4c   :  { %v976_v2 = vmul.f32 %v973_v0, %v3127_v15 }
 0xc4e   :  { %2800 = vtanh.f32 %v976_v2 }
 0xc54   :  { %v2799_v5 = vpop.eup %2798 }
 0xc55   :  { %v1073_v9 = vadd.f32 1.0, %v2799_v5 }
 0xc57   :  { %v1074_v10 = vmul.f32 0.5, %v1073_v9 }
 0xc58   :  { %v2801_v11 = vpop.eup %2800 }
 0xc59   :  { %v1075_v13 = vsel %vm3121_vm3, %v2799_v5, %v1074_v10  ;;  %v978_v14 = vadd.f32 1.0, %v2801_v11 }
 0xc5a   :  { %1078 = vrot.lane.b32.xlu1 %v1075_v13, %s2967_s27  ;;  %v1076_v22 = vmul.f32 %v1075_v13, %v3280_v42 }
 0xc5b   :  { %v979_v16 = vmul.f32 0.5, %v978_v14 }
 0xc5d   :  { %v980_v17 = vsel %vm3121_vm3, %v2801_v11, %v979_v16 }
 0xc5e   :  { %983 = vrot.lane.b32.xlu0 %v980_v17, %s2967_s27  ;;  %v981_v26 = vmul.f32 %v980_v17, %v3284_v45 }
 0xccc   :  { %v1079_v18 = vpop.permute.xlu1 %1078 }
 0xccd   :  { %v1081_v19 = vmul.f32 %v1079_v18, %v1075_v13 }
 0xccf   :  { %1083 = vrot.lane.b32.xlu1 %v1081_v19, %s2968_s28 }
 0xcd0   :  { %v984_v20 = vpop.permute.xlu0 %983 }
 0xcd1   :  { %v986_v21 = vmul.f32 %v984_v20, %v980_v17  ;;  %v156_v20 = vld [vmem:[%s155_s26] sm:$0x1] }
 0xcd2   :  { %157 = vst [vmem:[#allocation2 + $0x30] sm:$0x1] %v156_v20 }
 0xcd3   :  { %988 = vrot.lane.b32.xlu0 %v986_v21, %s2968_s28  ;;  %v160_v21 = vld [vmem:[%s159_s29] sm:$0x1] }
 0xcd4   :  { %161 = vst [vmem:[#allocation2 + $0x31] sm:$0x1] %v160_v21 }
 0xd41   :  { %v1084_v23 = vpop.permute.xlu1 %1083 }
 0xd42   :  { %v3325_v24 = vadd.f32 %v1084_v23, %v1076_v22 }
 0xd44   :  { %2802 = vtanh.f32 %v3325_v24 }
 0xd45   :  { %v989_v27 = vpop.permute.xlu0 %988 }
 0xd46   :  { %v3329_v28 = vadd.f32 %v989_v27, %v981_v26 }
 0xd48   :  { %2804 = vtanh.f32 %v3329_v28 }
 0xd4e   :  { %v2803_v29 = vpop.eup %2802 }
 0xd4f   :  { %1089 = vrot.lane.b32.xlu1 %v2803_v29, %s2967_s27 }
 0xd52   :  { %v2805_v30 = vpop.eup %2804 }
 0xd53   :  { %994 = vrot.lane.b32.xlu0 %v2805_v30, %s2967_s27 }
 0xdc1   :  { %v1090_v31 = vpop.permute.xlu1 %1089 }
 0xdc2   :  { %v1092_v33 = vmul.f32 %v1090_v31, %v1075_v13 }
 0xdc4   :  { %1094 = vrot.lane.b32.xlu0 %v1092_v33, %s2968_s28 }
 0xdc5   :  { %v995_v38 = vpop.permute.xlu0 %994 }
 0xdc6   :  { %v3335_v39 = vmul.f32 %v995_v38, %v980_v17 }
 0xdc8   :  { %1098 = vrot.lane.b32.xlu1 %v3335_v39, %s2967_s27 }
 0xe36   :  { %v1095_v40 = vpop.permute.xlu0 %1094 }
 0xe37   :  { %2503 = vmatmul.mubr.msk.f32.vlgmr.msra.gmra.mrb[10].mxu0 %vm203_vm4, %v1095_v40 }
 0xe38   :  { %2702 = vmatpush3.bf16.msra.mxu0 %v3137_v32  ;;  %2521 = vmatprep.mubr.msk.f32.mxu0 %vm2964_vm0, %v2965_v6 }
 0xe39   :  { %2703 = vmatprep.subr.bf16.mxu0 %v2963_v3 }
 0xe3a   :  { %v1099_v42 = vpop.permute.xlu1 %1098 }
 0xe3b   :  { %v1101_v43 = vsel %vm203_vm4, %v1095_v40, %v1099_v42 }
 0xe3c   :  { %2492 = vmatmul.mubr.msk.f32.vlgmr.msra.gmra.mrb[8].mxu1 %vm305_vm5, %v1101_v43  ;;  %2705 = vmatpush3.bf16.msra.mxu0 %v3140_v34 }
 0xe3d   :  { %2714 = vmatpush3.bf16.msra.mxu1 %v3093_v4  ;;  %2706 = vmatprep.subr.bf16.mxu0 %v2963_v3 }
 0xe3e   :  { %2715 = vmatprep.subr.bf16.mxu1 %v2963_v3  ;;  %2532 = vmatprep.mubr.msk.f32.mxu1 %vm2964_vm0, %v2965_v6 }
 0xe40   :  { %2708 = vmatpush3.bf16.msra.mxu0 %v3144_v37 }
 0xe41   :  { %2717 = vmatpush3.bf16.msra.mxu1 %v3109_v7  ;;  %2709 = vmatprep.subr.bf16.mxu0 %v2963_v3 }
 0xe42   :  { %2718 = vmatprep.subr.bf16.mxu1 %v2963_v3 }
 0xe44   :  { %2711 = vmatpush3.bf16.msra.mxu0 %v3149_v41 }
 0xe45   :  { %2730 = vmatprep.subr.bf16.mxu0 %v2963_v3 }
 0xf0a   :  { %v1265_v45 = vpop.f32.mrb[10].mxu0 }
 0xf0b   :  { %v1269_v46 = vadd.f32 %v1265_v45, %v175_v44  ;;  %v2504_v47 = vpop.f32.mrb[11].mxu0 }
 0xf0d   :  { %v1270_v48 = vmul.f32 %v1269_v46, %v3127_v15 }
 0xf0f   :  { %2806 = vtanh.f32 %v1270_v48  ;;  %v1171_v50 = vpop.f32.mrb[8].mxu1 }
 0xf10   :  { %v1172_v51 = vadd.f32 %v3177_v49, %v1171_v50  ;;  %v2493_v52 = vpop.f32.mrb[9].mxu1 }
 0xf12   :  { %v1175_v53 = vmul.f32 %v1172_v51, %v3127_v15 }
 0xf14   :  { %2808 = vtanh.f32 %v1175_v53 }
 0xf19   :  { %v2807_v55 = vpop.eup %2806 }
 0xf1a   :  { %v1272_v56 = vadd.f32 1.0, %v2807_v55 }
 0xf1c   :  { %v1273_v57 = vmul.f32 0.5, %v1272_v56 }
 0xf1e   :  { %v2809_v58 = vpop.eup %2808  ;;  %v1274_v59 = vsel %vm3121_vm3, %v2807_v55, %v1273_v57 }
 0xf1f   :  { %1277 = vrot.lane.b32.xlu1 %v1274_v59, %s2967_s27  ;;  %v1177_v60 = vadd.f32 1.0, %v2809_v58  ;;  %v1275_v5 = vmul.f32 %v1274_v59, %v3325_v24 }
 0xf21   :  { %v1178_v61 = vmul.f32 0.5, %v1177_v60 }
 0xf23   :  { %v1179_v62 = vsel %vm3121_vm3, %v2809_v58, %v1178_v61 }
 0xf24   :  { %1182 = vrot.lane.b32.xlu0 %v1179_v62, %s2967_s27  ;;  %v1180_v11 = vmul.f32 %v1179_v62, %v3329_v28  ;;  %v176_v28 = vld [vmem:[#allocation2 + $0x30] sm:$0xff] }
 0xf91   :  { %v1278_v63 = vpop.permute.xlu1 %1277 }
 0xf92   :  { %v1280_v0 = vmul.f32 %v1278_v63, %v1274_v59 }
 0xf94   :  { %1282 = vrot.lane.b32.xlu1 %v1280_v0, %s2968_s28  ;;  %v164_v0 = vld [vmem:[%s163_s13] sm:$0x1] }
 0xf95   :  { %165 = vst [vmem:[#allocation2 + $0x38] sm:$0x1] %v164_v0 }
 0xf96   :  { %v1183_v1 = vpop.permute.xlu0 %1182 }
 0xf97   :  { %v1185_v2 = vmul.f32 %v1183_v1, %v1179_v62  ;;  %v168_v1 = vld [vmem:[%s167_s14] sm:$0x1] }
 0xf98   :  { %169 = vst [vmem:[#allocation2 + $0x39] sm:$0x1] %v168_v1 }
 0xf99   :  { %1187 = vrot.lane.b32.xlu0 %v1185_v2, %s2968_s28 }
0x1006   :  { %v1283_v9 = vpop.permute.xlu1 %1282 }
0x1007   :  { %v3370_v10 = vadd.f32 %v1283_v9, %v1275_v5 }
0x1009   :  { %2810 = vtanh.f32 %v3370_v10 }
0x100b   :  { %v1188_v13 = vpop.permute.xlu0 %1187 }
0x100c   :  { %v3374_v14 = vadd.f32 %v1188_v13, %v1180_v11 }
0x100e   :  { %2812 = vtanh.f32 %v3374_v14 }
0x1013   :  { %v2811_v16 = vpop.eup %2810 }
0x1014   :  { %1288 = vrot.lane.b32.xlu1 %v2811_v16, %s2967_s27 }
0x1018   :  { %v2813_v17 = vpop.eup %2812 }
0x1019   :  { %1193 = vrot.lane.b32.xlu0 %v2813_v17, %s2967_s27 }
0x1086   :  { %v1289_v18 = vpop.permute.xlu1 %1288 }
0x1087   :  { %v1291_v19 = vmul.f32 %v1289_v18, %v1274_v59 }
0x1089   :  { %1293 = vrot.lane.b32.xlu0 %v1291_v19, %s2968_s28 }
0x108b   :  { %v1194_v22 = vpop.permute.xlu0 %1193 }
0x108c   :  { %v3380_v23 = vmul.f32 %v1194_v22, %v1179_v62 }
0x108e   :  { %1297 = vrot.lane.b32.xlu1 %v3380_v23, %s2967_s27 }
0x10fb   :  { %v1294_v24 = vpop.permute.xlu0 %1293 }
0x10fc   :  { %2533 = vmatmul.mubr.msk.f32.vlgmr.msra.gmra.mrb[10].mxu1 %vm203_vm4, %v1294_v24 }
0x10fd   :  { %2720 = vmatpush3.bf16.msra.mxu1 %v3137_v32  ;;  %2551 = vmatprep.mubr.msk.f32.mxu1 %vm2964_vm0, %v2965_v6 }
0x10fe   :  { %2721 = vmatprep.subr.bf16.mxu1 %v2963_v3 }
0x1100   :  { %v1298_v26 = vpop.permute.xlu1 %1297 }
0x1101   :  { %v1300_v27 = vsel %vm203_vm4, %v1294_v24, %v1298_v26  ;;  %2723 = vmatpush3.bf16.msra.mxu1 %v3140_v34 }
0x1102   :  { %2522 = vmatmul.mubr.msk.f32.vlgmr.msra.gmra.mrb[12].mxu0 %vm305_vm5, %v1300_v27  ;;  %2724 = vmatprep.subr.bf16.mxu1 %v2963_v3 }
0x1103   :  { %2732 = vmatpush3.bf16.msra.mxu0 %v3093_v4  ;;  %2562 = vmatprep.mubr.msk.f32.mxu0 %vm2964_vm0, %v2965_v6 }
0x1104   :  { %2733 = vmatprep.subr.bf16.mxu0 %v2963_v3 }
0x1105   :  { %2726 = vmatpush3.bf16.msra.mxu1 %v3144_v37 }
0x1106   :  { %2727 = vmatprep.subr.bf16.mxu1 %v2963_v3 }
0x1107   :  { %2735 = vmatpush3.bf16.msra.mxu0 %v3109_v7 }
0x1108   :  { %2736 = vmatprep.subr.bf16.mxu0 %v2963_v3 }
0x1109   :  { %2729 = vmatpush3.bf16.msra.mxu1 %v3149_v41 }
0x11cf   :  { %v1464_v29 = vpop.f32.mrb[10].mxu1 }
0x11d0   :  { %v1468_v30 = vadd.f32 %v1464_v29, %v176_v28  ;;  %v2534_v31 = vpop.f32.mrb[11].mxu1 }
0x11d2   :  { %v1469_v4 = vmul.f32 %v1468_v30, %v3127_v15 }
0x11d4   :  { %2814 = vtanh.f32 %v1469_v4 }
0x11d5   :  { %v1370_v33 = vpop.f32.mrb[12].mxu0 }
0x11d6   :  { %v1371_v35 = vadd.f32 %v3177_v49, %v1370_v33  ;;  %v2523_v36 = vpop.f32.mrb[13].mxu0 }
0x11d8   :  { %v1374_v38 = vmul.f32 %v1371_v35, %v3127_v15 }
0x11da   :  { %2816 = vtanh.f32 %v1374_v38 }
0x11de   :  { %v2815_v40 = vpop.eup %2814 }
0x11df   :  { %v1471_v7 = vadd.f32 1.0, %v2815_v40 }
0x11e1   :  { %v1472_v42 = vmul.f32 0.5, %v1471_v7 }
0x11e3   :  { %v1473_v43 = vsel %vm3121_vm3, %v2815_v40, %v1472_v42 }
0x11e4   :  { %v2817_v44 = vpop.eup %2816  ;;  %1476 = vrot.lane.b32.xlu1 %v1473_v43, %s2967_s27  ;;  %v1474_v53 = vmul.f32 %v1473_v43, %v3370_v10 }
0x11e5   :  { %v1376_v45 = vadd.f32 1.0, %v2817_v44 }
0x11e7   :  { %v1377_v46 = vmul.f32 0.5, %v1376_v45 }
0x11e9   :  { %v1378_v47 = vsel %vm3121_vm3, %v2817_v44, %v1377_v46 }
0x11ea   :  { %1381 = vrot.lane.b32.xlu0 %v1378_v47, %s2967_s27  ;;  %v1379_v57 = vmul.f32 %v1378_v47, %v3374_v14 }
0x1256   :  { %v1477_v48 = vpop.permute.xlu1 %1476 }
0x1257   :  { %v1479_v50 = vmul.f32 %v1477_v48, %v1473_v43 }
0x1259   :  { %1481 = vrot.lane.b32.xlu1 %v1479_v50, %s2968_s28 }
0x125c   :  { %v1382_v51 = vpop.permute.xlu0 %1381 }
0x125d   :  { %v1384_v52 = vmul.f32 %v1382_v51, %v1378_v47 }
0x125f   :  { %1386 = vrot.lane.b32.xlu0 %v1384_v52, %s2968_s28 }
0x12cb   :  { %v1482_v55 = vpop.permute.xlu1 %1481 }
0x12cc   :  { %v3414_v56 = vadd.f32 %v1482_v55, %v1474_v53 }
0x12ce   :  { %2818 = vtanh.f32 %v3414_v56 }
0x12d1   :  { %v1387_v58 = vpop.permute.xlu0 %1386 }
0x12d2   :  { %v3418_v59 = vadd.f32 %v1387_v58, %v1379_v57 }
0x12d4   :  { %2820 = vtanh.f32 %v3418_v59 }
0x12d8   :  { %v2819_v60 = vpop.eup %2818 }
0x12d9   :  { %1487 = vrot.lane.b32.xlu1 %v2819_v60, %s2967_s27 }
0x12de   :  { %v2821_v61 = vpop.eup %2820 }
0x12df   :  { %1392 = vrot.lane.b32.xlu0 %v2821_v61, %s2967_s27 }
0x134b   :  { %v1488_v62 = vpop.permute.xlu1 %1487 }
0x134c   :  { %v1490_v63 = vmul.f32 %v1488_v62, %v1473_v43 }
0x134e   :  { %1492 = vrot.lane.b32.xlu0 %v1490_v63, %s2968_s28 }
0x1351   :  { %v1393_v2 = vpop.permute.xlu0 %1392 }
0x1352   :  { %v3424_v5 = vmul.f32 %v1393_v2, %v1378_v47 }
0x1354   :  { %1496 = vrot.lane.b32.xlu1 %v3424_v5, %s2967_s27 }
0x13c0   :  { %v1493_v9 = vpop.permute.xlu0 %1492 }
0x13c1   :  { %2563 = vmatmul.mubr.msk.f32.vlgmr.msra.gmra.mrb[14].mxu0 %vm203_vm4, %v1493_v9 }
0x13c2   :  { %2738 = vmatpush3.bf16.msra.mxu0 %v3137_v32  ;;  %2581 = vmatprep.mubr.msk.f32.mxu0 %vm2964_vm0, %v2965_v6  ;;  %v177_v32 = vld [vmem:[#allocation2 + $0x38] sm:$0xff] }
0x13c3   :  { %2739 = vmatprep.subr.bf16.mxu0 %v2963_v3 }
0x13c6   :  { %v1497_v10 = vpop.permute.xlu1 %1496  ;;  %2741 = vmatpush3.bf16.msra.mxu0 %v3140_v34 }
0x13c7   :  { %v1499_v11 = vsel %vm203_vm4, %v1493_v9, %v1497_v10  ;;  %2742 = vmatprep.subr.bf16.mxu0 %v2963_v3 }
0x13c8   :  { %2552 = vmatmul.mubr.msk.f32.vlgmr.msra.gmra.mrb[12].mxu1 %vm305_vm5, %v1499_v11 }
0x13ca   :  { %2744 = vmatpush3.bf16.msra.mxu0 %v3144_v37 }
0x13cb   :  { %2745 = vmatprep.subr.bf16.mxu0 %v2963_v3 }
0x13ce   :  { %2747 = vmatpush3.bf16.msra.mxu0 %v3149_v41 }
0x1494   :  { %v1663_v13 = vpop.f32.mrb[14].mxu0 }
0x1495   :  { %v1667_v6 = vadd.f32 %v1663_v13, %v177_v32  ;;  %v2564_v14 = vpop.f32.mrb[15].mxu0 }
0x1497   :  { %v1668_v16 = vmul.f32 %v1667_v6, %v3127_v15 }
0x1499   :  { %2822 = vtanh.f32 %v1668_v16 }
0x149b   :  { %v1569_v34 = vpop.f32.mrb[12].mxu1 }
0x149c   :  { %v1570_v17 = vadd.f32 %v3177_v49, %v1569_v34  ;;  %v2553_v18 = vpop.f32.mrb[13].mxu1 }
0x149e   :  { %v1573_v19 = vmul.f32 %v1570_v17, %v3127_v15 }
0x14a0   :  { %2824 = vtanh.f32 %v1573_v19 }
0x14a3   :  { %v2823_v20 = vpop.eup %2822 }
0x14a4   :  { %v1670_v37 = vadd.f32 1.0, %v2823_v20 }
0x14a6   :  { %v1671_v21 = vmul.f32 0.5, %v1670_v37 }
0x14a8   :  { %v1672_v3 = vsel %vm3121_vm3, %v2823_v20, %v1671_v21 }
0x14a9   :  { %1675 = vrot.lane.b32.xlu1 %v1672_v3, %s2967_s27  ;;  %v1673_v31 = vmul.f32 %v1672_v3, %v3414_v56 }
0x14aa   :  { %v2825_v41 = vpop.eup %2824 }
0x14ab   :  { %v1575_v22 = vadd.f32 1.0, %v2825_v41 }
0x14ad   :  { %v1576_v24 = vmul.f32 0.5, %v1575_v22 }
0x14af   :  { %v1577_v26 = vsel %vm3121_vm3, %v2825_v41, %v1576_v24 }
0x14b0   :  { %1580 = vrot.lane.b32.xlu0 %v1577_v26, %s2967_s27  ;;  %v1578_v35 = vmul.f32 %v1577_v26, %v3418_v59 }
0x151b   :  { %v1676_v27 = vpop.permute.xlu1 %1675 }
0x151c   :  { %v1678_v28 = vmul.f32 %v1676_v27, %v1672_v3 }
0x151e   :  { %1680 = vrot.lane.b32.xlu1 %v1678_v28, %s2968_s28 }
0x1522   :  { %v1581_v29 = vpop.permute.xlu0 %1580 }
0x1523   :  { %v1583_v30 = vmul.f32 %v1581_v29, %v1577_v26 }
0x1525   :  { %1585 = vrot.lane.b32.xlu0 %v1583_v30, %s2968_s28 }
0x1590   :  { %v1681_v4 = vpop.permute.xlu1 %1680 }
0x1591   :  { %v1683_v33 = vadd.f32 %v1681_v4, %v1673_v31 }
0x1593   :  { %2826 = vtanh.f32 %v1683_v33 }
0x1597   :  { %v1586_v36 = vpop.permute.xlu0 %1585 }
0x1598   :  { %v1588_v38 = vadd.f32 %v1586_v36, %v1578_v35 }
0x159a   :  { %2828 = vtanh.f32 %v1588_v38 }
0x159d   :  { %v2827_v40 = vpop.eup %2826 }
0x159e   :  { %1686 = vrot.lane.b32.xlu1 %v2827_v40, %s2967_s27 }
0x15a4   :  { %v2829_v7 = vpop.eup %2828 }
0x15a5   :  { %1591 = vrot.lane.b32.xlu0 %v2829_v7, %s2967_s27 }
0x1610   :  { %v1687_v42 = vpop.permute.xlu1 %1686 }
0x1611   :  { %v1689_v43 = vmul.f32 %v1687_v42, %v1672_v3 }
0x1613   :  { %1691 = vrot.lane.b32.xlu0 %v1689_v43, %s2968_s28 }
0x1617   :  { %v1592_v44 = vpop.permute.xlu0 %1591 }
0x1618   :  { %v3456_v45 = vmul.f32 %v1592_v44, %v1577_v26 }
0x161a   :  { %1695 = vrot.lane.b32.xlu1 %v3456_v45, %s2967_s27 }
0x1685   :  { %v1692_v46 = vpop.permute.xlu0 %1691 }
0x168c   :  { %v1696_v47 = vpop.permute.xlu1 %1695 }
0x168d   :  { %v1698_v48 = vsel %vm203_vm4, %v1692_v46, %v1696_v47 }
0x168e   :  { %2582 = vmatmul.mubr.msk.f32.vlgmr.msra.gmra.mrb[16].mxu0 %vm305_vm5, %v1698_v48 }
0x1761   :  { %v1768_v50 = vpop.f32.mrb[16].mxu0 }
0x1762   :  { %v1769_v51 = vadd.f32 %v3177_v49, %v1768_v50  ;;  %v2583_v52 = vpop.f32.mrb[17].mxu0 }
0x1764   :  { %v1772_v53 = vmul.f32 %v1769_v51, %v3127_v15 }
0x1766   :  { %2830 = vtanh.f32 %v1772_v53 }
0x1770   :  { %v2831_v55 = vpop.eup %2830 }
0x1771   :  { %v1774_v56 = vadd.f32 1.0, %v2831_v55 }
0x1773   :  { %v1775_v57 = vmul.f32 0.5, %v1774_v56 }
0x1775   :  { %v1776_v58 = vsel %vm3121_vm3, %v2831_v55, %v1775_v57 }
0x1776   :  { %1779 = vrot.lane.b32.xlu0 %v1776_v58, %s2967_s27  ;;  %v1777_v12 = vmul.f32 %v1776_v58, %v1588_v38 }
0x17e8   :  { %v1780_v59 = vpop.permute.xlu0 %1779 }
0x17e9   :  { %v1782_v60 = vmul.f32 %v1780_v59, %v1776_v58 }
0x17eb   :  { %1784 = vrot.lane.b32.xlu1 %v1782_v60, %s2968_s28 }
0x17ef   :  { %1795 = vrot.lane.b32.xlu1 %v3199_v25, %s2968_s28 }
0x17f3   :  { %1799 = vrot.lane.b32.xlu1 %v3290_v54, %s2968_s28 }
0x17f7   :  { %1803 = vrot.lane.b32.xlu1 %v3380_v23, %s2968_s28 }
0x17fb   :  { %1807 = vrot.lane.b32.xlu1 %v3456_v45, %s2968_s28 }
0x185d   :  { %v1785_v15 = vpop.permute.xlu1 %1784 }
0x185e   :  { %v1787_v49 = vadd.f32 %v1785_v15, %v1777_v12 }
0x1860   :  { %2832 = vtanh.f32 %v1787_v49 }
0x1861   :  { %v1796_v61 = vpop.permute.xlu1 %1795 }
0x1862   :  { %v1819_v62 = vsel %vm203_vm4, %v1796_v61, 0.0 }
0x1863   :  { %1820 = vadd.xlane.f32.xlu1 %v1819_v62  ;;  %v2209_v62 = vld [vmem:[%s3613_s5] ss:$0 sm:$0xff] }
0x1865   :  { %v1800_v13 = vpop.permute.xlu1 %1799 }
0x1866   :  { %v1825_v16 = vsel %vm203_vm4, %v1800_v13, 0.0 }
0x1869   :  { %v1804_v14 = vpop.permute.xlu1 %1803 }
0x186a   :  { %v2833_v63 = vpop.eup %2832  ;;  %v1831_v34 = vsel %vm203_vm4, %v1804_v14, 0.0 }
0x186b   :  { %1790 = vrot.lane.b32.xlu0 %v2833_v63, %s2967_s27 }
0x186d   :  { %v1808_v17 = vpop.permute.xlu1 %1807 }
0x186e   :  { %v1837_v18 = vsel %vm203_vm4, %v1808_v17, 0.0 }
0x186f   :  { %1797 = vrot.lane.b32.xlu0 %v3244_v8, %s2968_s28 }
0x1873   :  { %1801 = vrot.lane.b32.xlu0 %v3335_v39, %s2968_s28 }
0x1877   :  { %1805 = vrot.lane.b32.xlu0 %v3424_v5, %s2968_s28 }
0x18dd   :  { %v1791_v0 = vpop.permute.xlu0 %1790 }
0x18de   :  { %v3484_v1 = vmul.f32 %v1791_v0, %v1776_v58 }
0x18e0   :  { %1809 = vrot.lane.b32.xlu0 %v3484_v1, %s2968_s28 }
0x18e1   :  { %v1798_v2 = vpop.permute.xlu0 %1797 }
0x18e2   :  { %v1822_v6 = vsel %vm203_vm4, %v1798_v2, 0.0  ;;  %v1990_v2 = vld [vmem:[#allocation10] sm:$0xff] }
0x18e5   :  { %v1802_v9 = vpop.permute.xlu0 %1801 }
0x18e6   :  { %v1828_v10 = vsel %vm203_vm4, %v1802_v9, 0.0  ;;  %v1991_v9 = vld [vmem:[#allocation10 + $0x8] sm:$0xff] }
0x18e7   :  { %1829 = vadd.xlane.f32.xlu1 %v1828_v10  ;;  %v1992_v10 = vld [vmem:[#allocation10 + $0x10] sm:$0xff] }
0x18e9   :  { %v1806_v11 = vpop.permute.xlu0 %1805 }
0x18ea   :  { %v1834_v32 = vsel %vm203_vm4, %v1806_v11, 0.0  ;;  %v2748_v11 = vpack.c.bf16 %v1991_v9, %v1990_v2 }
0x18eb   :  { %1835 = vadd.xlane.f32.xlu1 %v1834_v32  ;;  %v1993_v32 = vld [vmem:[#allocation10 + $0x18] sm:$0xff] }
0x18ec   :  { %v2752_v13 = vpack.c.bf16 %v1993_v32, %v1992_v10  ;;  %2749 = vmatprep.subr.bf16.mxu1 %v2748_v11 }
0x18ed   :  { %2751 = vmatpush3.bf16.msra.mxu1 %v2748_v11 }
0x18ee   :  { %2753 = vmatprep.subr.bf16.mxu1 %v2752_v13 }
0x18f0   :  { %v1821_v19 = vpop.xlane.xlu1 %1820 }
0x18f1   :  { %v1844_v20 = vmul.f32 0.03125, %v1821_v19  ;;  %2755 = vmatpush3.bf16.msra.mxu1 %v2752_v13 }
0x18f3   :  { %v3495_v37 = vsub.f32 %v3199_v25, %v1844_v20 }
0x18f5   :  { %v1860_v21 = vmul.f32 %v3495_v37, %v3495_v37 }
0x18ff   :  { %1823 = vadd.xlane.f32.xlu0 %v1822_v6 }
0x1903   :  { %1826 = vadd.xlane.f32.xlu0 %v1825_v16 }
0x1907   :  { %1832 = vadd.xlane.f32.xlu0 %v1831_v34 }
0x190b   :  { %1838 = vadd.xlane.f32.xlu0 %v1837_v18 }
0x1921   :  { %1876 = vrot.lane.b32.xlu0 %v1860_v21, %s2968_s28 }
0x1952   :  { %v1810_v3 = vpop.permute.xlu0 %1809 }
0x1953   :  { %v1840_v41 = vsel %vm203_vm4, %v1810_v3, 0.0 }
0x1954   :  { %1841 = vadd.xlane.f32.xlu1 %v1840_v41 }
0x1974   :  { %v1830_v22 = vpop.xlane.xlu1 %1829 }
0x1975   :  { %v1847_v24 = vmul.f32 0.03125, %v1830_v22 }
0x1977   :  { %v3502_v26 = vsub.f32 %v3335_v39, %v1847_v24 }
0x1978   :  { %v1836_v27 = vpop.xlane.xlu1 %1835 }
0x1979   :  { %v1849_v28 = vmul.f32 0.03125, %v1836_v27  ;;  %v1863_v25 = vmul.f32 %v3502_v26, %v3502_v26 }
0x197b   :  { %v3507_v29 = vsub.f32 %v3424_v5, %v1849_v28  ;;  %1882 = vrot.lane.b32.xlu0 %v1863_v25, %s2968_s28 }
0x197d   :  { %v1865_v30 = vmul.f32 %v3507_v29, %v3507_v29 }
0x197f   :  { %1886 = vrot.lane.b32.xlu0 %v1865_v30, %s2968_s28 }
0x198c   :  { %v1824_v31 = vpop.xlane.xlu0 %1823 }
0x198d   :  { %v1845_v4 = vmul.f32 0.03125, %v1824_v31 }
0x198f   :  { %v3514_v39 = vsub.f32 %v3244_v8, %v1845_v4 }
0x1990   :  { %v1827_v33 = vpop.xlane.xlu0 %1826 }
0x1991   :  { %v1846_v35 = vmul.f32 0.03125, %v1827_v33  ;;  %v1861_v36 = vmul.f32 %v3514_v39, %v3514_v39 }
0x1993   :  { %v3519_v5 = vsub.f32 %v3290_v54, %v1846_v35  ;;  %1878 = vrot.lane.b32.xlu1 %v1861_v36, %s2968_s28 }
0x1994   :  { %v1833_v38 = vpop.xlane.xlu0 %1832 }
0x1995   :  { %v1848_v40 = vmul.f32 0.03125, %v1833_v38  ;;  %v1862_v7 = vmul.f32 %v3519_v5, %v3519_v5 }
0x1997   :  { %v3525_v42 = vsub.f32 %v3380_v23, %v1848_v40  ;;  %1880 = vrot.lane.b32.xlu1 %v1862_v7, %s2968_s28 }
0x1998   :  { %v1839_v8 = vpop.xlane.xlu0 %1838 }
0x1999   :  { %v1850_v43 = vmul.f32 0.03125, %v1839_v8  ;;  %v1864_v44 = vmul.f32 %v3525_v42, %v3525_v42 }
0x199b   :  { %v3531_v54 = vsub.f32 %v3456_v45, %v1850_v43  ;;  %1884 = vrot.lane.b32.xlu1 %v1864_v44, %s2968_s28 }
0x199c   :  { %v1877_v47 = vpop.permute.xlu0 %1876 }
0x199d   :  { %v1866_v46 = vmul.f32 %v3531_v54, %v3531_v54  ;;  %v1900_v23 = vsel %vm203_vm4, %v1877_v47, 0.0 }
0x199f   :  { %1888 = vrot.lane.b32.xlu1 %v1866_v46, %s2968_s28 }
0x19c3   :  { %1901 = vadd.xlane.f32.xlu1 %v1900_v23 }
0x19e1   :  { %v1842_v48 = vpop.xlane.xlu1 %1841 }
0x19e2   :  { %v1851_v50 = vmul.f32 0.03125, %v1842_v48 }
0x19e4   :  { %v3539_v51 = vsub.f32 %v3484_v1, %v1851_v50  ;;  %v2210_v1 = vld [vmem:[%s3614_s6] ss:$0 sm:$0xff] }
0x19e6   :  { %v1867_v45 = vmul.f32 %v3539_v51, %v3539_v51 }
0x19e8   :  { %1890 = vrot.lane.b32.xlu0 %v1867_v45, %s2968_s28 }
0x19ed   :  { %v1883_v52 = vpop.permute.xlu0 %1882 }
0x19ee   :  { %v1909_v53 = vsel %vm203_vm4, %v1883_v52, 0.0 }
0x19ef   :  { %1910 = vadd.xlane.f32.xlu1 %v1909_v53 }
0x19f1   :  { %v1887_v55 = vpop.permute.xlu0 %1886 }
0x19f2   :  { %v1915_v56 = vsel %vm203_vm4, %v1887_v55, 0.0 }
0x19f3   :  { %1916 = vadd.xlane.f32.xlu1 %v1915_v56 }
0x1a05   :  { %v1879_v57 = vpop.permute.xlu1 %1878 }
0x1a06   :  { %v1903_v58 = vsel %vm203_vm4, %v1879_v57, 0.0 }
0x1a07   :  { %1904 = vadd.xlane.f32.xlu0 %v1903_v58 }
0x1a09   :  { %v1881_v59 = vpop.permute.xlu1 %1880 }
0x1a0a   :  { %v1906_v60 = vsel %vm203_vm4, %v1881_v59, 0.0 }
0x1a0b   :  { %1907 = vadd.xlane.f32.xlu0 %v1906_v60 }
0x1a0d   :  { %v1885_v12 = vpop.permute.xlu1 %1884 }
0x1a0e   :  { %v1912_v15 = vsel %vm203_vm4, %v1885_v12, 0.0 }
0x1a0f   :  { %1913 = vadd.xlane.f32.xlu0 %v1912_v15 }
0x1a11   :  { %v1889_v49 = vpop.permute.xlu1 %1888 }
0x1a12   :  { %v1918_v61 = vsel %vm203_vm4, %v1889_v49, 0.0 }
0x1a13   :  { %1919 = vadd.xlane.f32.xlu0 %v1918_v61 }
0x1a29   :  { %1962 = vrot.lane.b32.xlu0 %v2209_v62, %s2969_s4 }
0x1a50   :  { %v1902_v14 = vpop.xlane.xlu1 %1901 }
0x1a51   :  { %v1924_v18 = vmul.f32 0.03125, %v1902_v14 }
0x1a53   :  { %v1932_v3 = vadd.f32 1e-05, %v1924_v18 }
0x1a5a   :  { %v1891_v63 = vpop.permute.xlu0 %1890 }
0x1a5b   :  { %v1921_v0 = vsel %vm203_vm4, %v1891_v63, 0.0 }
0x1a5c   :  { %1922 = vadd.xlane.f32.xlu1 %v1921_v0 }
0x1a6d   :  { %1979 = vrot.lane.b32.xlu1 %v2210_v1, %s2969_s4 }
0x1a7c   :  { %v1911_v17 = vpop.xlane.xlu1 %1910 }
0x1a7d   :  { %v1927_v41 = vmul.f32 0.03125, %v1911_v17 }
0x1a7f   :  { %v1935_v25 = vadd.f32 1e-05, %v1927_v41 }
0x1a80   :  { %v1917_v22 = vpop.xlane.xlu1 %1916 }
0x1a81   :  { %v1929_v30 = vmul.f32 0.03125, %v1917_v22 }
0x1a83   :  { %v1937_v33 = vadd.f32 1e-05, %v1929_v30 }
0x1a94   :  { %v1905_v6 = vpop.xlane.xlu0 %1904 }
0x1a95   :  { %v1925_v34 = vmul.f32 0.03125, %v1905_v6 }
0x1a97   :  { %v1933_v20 = vadd.f32 1e-05, %v1925_v34 }
0x1a98   :  { %v1908_v16 = vpop.xlane.xlu0 %1907 }
0x1a99   :  { %v1926_v21 = vmul.f32 0.03125, %v1908_v16  ;;  %2834 = vrsqrt.f32 %v1933_v20  ;;  %v2211_v16 = vld [vmem:[%s3616_s8] ss:$0 sm:$0xff] }
0x1a9a   :  { %2836 = vrsqrt.f32 %v1932_v3 }
0x1a9b   :  { %v1934_v24 = vadd.f32 1e-05, %v1926_v21 }
0x1a9c   :  { %v1914_v19 = vpop.xlane.xlu0 %1913 }
0x1a9d   :  { %v1928_v27 = vmul.f32 0.03125, %v1914_v19  ;;  %2838 = vrsqrt.f32 %v1934_v24 }
0x1a9e   :  { %2840 = vrsqrt.f32 %v1935_v25 }
0x1a9f   :  { %v1936_v31 = vadd.f32 1e-05, %v1928_v27 }
0x1aa0   :  { %v1920_v28 = vpop.xlane.xlu0 %1919 }
0x1aa1   :  { %v1930_v4 = vmul.f32 0.03125, %v1920_v28  ;;  %2842 = vrsqrt.f32 %v1936_v31 }
0x1aa2   :  { %2844 = vrsqrt.f32 %v1937_v33 }
0x1aa3   :  { %v1938_v35 = vadd.f32 1e-05, %v1930_v4  ;;  %v2835_v36 = vpop.eup %2834 }
0x1aa4   :  { %v2837_v38 = vpop.eup %2836  ;;  %v1949_v40 = vmul.f32 %v2835_v36, %v3514_v39  ;;  %v1963_v8 = vpop.permute.xlu0 %1962 }
0x1aa5   :  { %2846 = vrsqrt.f32 %v1938_v35  ;;  %v1948_v46 = vmul.f32 %v2837_v38, %v3495_v37 }
0x1aa6   :  { %v1966_v48 = vmul.f32 %v1963_v8, %v1949_v40 }
0x1aa7   :  { %v2839_v7 = vpop.eup %2838  ;;  %v1965_v50 = vmul.f32 %v1963_v8, %v1948_v46 }
0x1aa8   :  { %v2841_v47 = vpop.eup %2840  ;;  %v1950_v45 = vmul.f32 %v2839_v7, %v3519_v5 }
0x1aa9   :  { %v1951_v57 = vmul.f32 %v2841_v47, %v3502_v26 }
0x1aaa   :  { %v1967_v37 = vmul.f32 %v1963_v8, %v1950_v45 }
0x1aab   :  { %v2843_v52 = vpop.eup %2842  ;;  %v1968_v58 = vmul.f32 %v1963_v8, %v1951_v57 }
0x1aac   :  { %v2845_v39 = vpop.eup %2844  ;;  %v1952_v59 = vmul.f32 %v2843_v52, %v3525_v42 }
0x1aad   :  { %v1953_v5 = vmul.f32 %v2845_v39, %v3507_v29 }
0x1aae   :  { %v1969_v26 = vmul.f32 %v1963_v8, %v1952_v59 }
0x1aaf   :  { %v2847_v60 = vpop.eup %2846  ;;  %v1970_v49 = vmul.f32 %v1963_v8, %v1953_v5 }
0x1ab0   :  { %v1954_v61 = vmul.f32 %v2847_v60, %v3531_v54 }
0x1ab2   :  { %v1971_v42 = vmul.f32 %v1963_v8, %v1954_v61 }
0x1ae9   :  { %v1923_v43 = vpop.xlane.xlu1 %1922 }
0x1aea   :  { %v1931_v44 = vmul.f32 0.03125, %v1923_v43 }
0x1aec   :  { %v1939_v23 = vadd.f32 1e-05, %v1931_v44 }
0x1aed   :  { %v1980_v53 = vpop.permute.xlu1 %1979 }
0x1aee   :  { %2848 = vrsqrt.f32 %v1939_v23  ;;  %v1983_v55 = vadd.f32 %v1980_v53, %v1966_v48  ;;  %v1982_v56 = vadd.f32 %v1980_v53, %v1965_v50  ;;  %v1985_v12 = vadd.f32 %v1980_v53, %v1968_v58 }
0x1aef   :  { %v1984_v15 = vadd.f32 %v1980_v53, %v1967_v37  ;;  %v1987_v62 = vadd.f32 %v1980_v53, %v1970_v49  ;;  %v1986_v63 = vadd.f32 %v1980_v53, %v1969_v26  ;;  %v1988_v2 = vadd.f32 %v1980_v53, %v1971_v42 }
0x1af0   :  { %2011 = vrot.lane.b32.xlu0 %v1983_v55, %s2968_s28  ;;  %2009 = vrot.lane.b32.xlu1 %v1982_v56, %s2968_s28 }
0x1af4   :  { %2015 = vrot.lane.b32.xlu0 %v1985_v12, %s2968_s28  ;;  %2013 = vrot.lane.b32.xlu1 %v1984_v15, %s2968_s28 }
0x1af8   :  { %v2849_v0 = vpop.eup %2848  ;;  %2019 = vrot.lane.b32.xlu0 %v1987_v62, %s2968_s28  ;;  %2017 = vrot.lane.b32.xlu1 %v1986_v63, %s2968_s28 }
0x1af9   :  { %v1955_v1 = vmul.f32 %v2849_v0, %v3539_v51 }
0x1afb   :  { %v1972_v29 = vmul.f32 %v1963_v8, %v1955_v1 }
0x1afc   :  { %2021 = vrot.lane.b32.xlu1 %v1988_v2, %s2968_s28 }
0x1afd   :  { %v1989_v9 = vadd.f32 %v1980_v53, %v1972_v29 }
0x1aff   :  { %2023 = vrot.lane.b32.xlu0 %v1989_v9, %s2968_s28 }
0x1b62   :  { %v2012_v10 = vpop.permute.xlu0 %2011  ;;  %v2010_v11 = vpop.permute.xlu1 %2009 }
0x1b63   :  { %2592 = vmatprep.mubr.msk.f32.mxu1 %vm203_vm4, %v2010_v11 }
0x1b64   :  { %2593 = vmatmul.mubr.msk.f32.vlgmr.msra.gmra.mrb[14].mxu1 %vm203_vm4, %v2012_v10 }
0x1b66   :  { %v2016_v54 = vpop.permute.xlu0 %2015  ;;  %v2014_v32 = vpop.permute.xlu1 %2013 }
0x1b67   :  { %2595 = vmatprep.mubr.msk.f32.mxu1 %vm203_vm4, %v2014_v32 }
0x1b68   :  { %2596 = vmatmul.mubr.msk.f32.gmra.mrb[16].mxu1 %vm203_vm4, %v2016_v54 }
0x1b6a   :  { %v2020_v51 = vpop.permute.xlu0 %2019  ;;  %v2018_v13 = vpop.permute.xlu1 %2017 }
0x1b6b   :  { %2598 = vmatprep.mubr.msk.f32.mxu1 %vm203_vm4, %v2018_v13 }
0x1b6c   :  { %2599 = vmatmul.mubr.msk.f32.gmra.mrb[18].mxu1 %vm203_vm4, %v2020_v51 }
0x1b6e   :  { %v2022_v6 = vpop.permute.xlu1 %2021 }
0x1b6f   :  { %2601 = vmatprep.mubr.msk.f32.mxu1 %vm203_vm4, %v2022_v6 }
0x1b71   :  { %v2024_v14 = vpop.permute.xlu0 %2023 }
0x1b72   :  { %2602 = vmatmul.mubr.msk.f32.gmra.mrb[20].mxu1 %vm203_vm4, %v2024_v14 }
0x1c37   :  { %v2594_v34 = vpop.f32.mrb[14].mxu1 }
0x1c38   :  { %v2113_v17 = vadd.f32 %v2594_v34, %v2211_v16  ;;  %v2107_v18 = vpop.f32.mrb[15].mxu1 }
0x1c39   :  { %v2108_v19 = vadd.f32 %v2211_v16, %v2107_v18 }
0x1c3a   :  { %2147 = vst [vmem:[%s3617_s9 + $0x8] sm:$0xff] %v2113_v17 }
0x1c3b   :  { %2146 = vst [vmem:[%s3617_s9] sm:$0xff] %v2108_v19  ;;  %v2597_v20 = vpop.f32.mrb[16].mxu1 }
0x1c3c   :  { %v2123_v21 = vadd.f32 %v2597_v20, %v2211_v16  ;;  %v2117_v3 = vpop.f32.mrb[17].mxu1 }
0x1c3d   :  { %v2118_v41 = vadd.f32 %v2211_v16, %v2117_v3 }
0x1c3e   :  { %2149 = vst [vmem:[%s3617_s9 + $0x18] sm:$0xff] %v2123_v21 }
0x1c3f   :  { %2148 = vst [vmem:[%s3617_s9 + $0x10] sm:$0xff] %v2118_v41  ;;  %v2600_v22 = vpop.f32.mrb[18].mxu1 }
0x1c40   :  { %v2133_v24 = vadd.f32 %v2600_v22, %v2211_v16  ;;  %v2127_v27 = vpop.f32.mrb[19].mxu1 }
0x1c41   :  { %v2128_v28 = vadd.f32 %v2211_v16, %v2127_v27 }
0x1c42   :  { %2151 = vst [vmem:[%s3617_s9 + $0x28] sm:$0xff] %v2133_v24 }
0x1c43   :  { %2150 = vst [vmem:[%s3617_s9 + $0x20] sm:$0xff] %v2128_v28 }
0x1c45   :  { %v2603_v25 = vpop.f32.mrb[20].mxu1 }
0x1c46   :  { %v2143_v30 = vadd.f32 %v2603_v25, %v2211_v16  ;;  %v2137_v31 = vpop.f32.mrb[21].mxu1 }
0x1c47   :  { %v2138_v4 = vadd.f32 %v2211_v16, %v2137_v31 }
0x1c48   :  { %2153 = vst [vmem:[%s3617_s9 + $0x38] sm:$0xff] %v2143_v30 }
0x1c49   :  { %2152 = vst [vmem:[%s3617_s9 + $0x30] sm:$0xff] %v2138_v4 }
0x1c4a   :  { %2158 = vsyncpa [#allocation4], 1 }
0x1c4b   :  { %2159 = vsyncpa [#allocation8], 1 }
0x1c4c   :  { %2160 = vsyncpa [#allocation11], 1 }
0x1c4d   :  { %2161 = vsyncpa [#allocation5], 1 }

</bundles_post_ra>
